<compile_context>
chip_gen: v5e
topology: v5e:2x2
jax: 0.10.0
libtpu: 0.0.40
codegen_flags: <defaults>
</compile_context>

<pallas_src>
import jax
import jax.numpy as jnp
from jax.experimental import pallas as pl
from jax.experimental.pallas import tpu as pltpu


def _round_up(n, m):
    return -(-n // m) * m


def _slnet_kernel(x_ref, w1_ref, w2_ref, w3_ref, c12_ref, b3_ref, out_ref):
    x = x_ref[...]                       # (bt, D_pad) in compute dtype
    c12 = c12_ref[...]                   # (2, H) f32 folded biases

    # fc1 (+ folded BatchNorm1d) + relu
    h1 = jnp.dot(x, w1_ref[...], preferred_element_type=jnp.float32)
    h1 = jnp.maximum(h1 + c12[0:1, :], 0.0)
    h1 = h1.astype(w2_ref.dtype)

    # fc3 (+ folded BatchNorm1d) + relu
    h2 = jnp.dot(h1, w2_ref[...], preferred_element_type=jnp.float32)
    h2 = jnp.maximum(h2 + c12[1:2, :], 0.0)
    h2 = h2.astype(w3_ref.dtype)

    # output layer (padded to 128 lanes; padded columns carry bias = -1e30,
    # so they contribute exp(...)=0 to the softmax sum) + log_softmax(dim=1)
    logits = jnp.dot(h2, w3_ref[...], preferred_element_type=jnp.float32)
    logits = logits + b3_ref[...]
    m = jnp.max(logits, axis=1, keepdims=True)
    z = logits - m
    lse = jnp.log(jnp.sum(jnp.exp(z), axis=1, keepdims=True))
    out_ref[...] = (z - lse).astype(out_ref.dtype)


def slnet_forward(x, params, *, batch_tile=256, compute_dtype=jnp.float32):
    """x: (B, dim) float32.  Returns (B, 5) log-probabilities (float32)."""
    (w1, b1, g1, be1, rm1, rv1,
     w2, b2, g2, be2, rm2, rv2,
     w3, b3) = params
    eps = 1e-5
    f32 = jnp.float32

    B, D = x.shape
    H = w1.shape[1]          # 512
    O = w3.shape[1]          # 5
    OP = 128                 # lane-dense padded output width

    # ---- Fold BatchNorm running stats into the weights / biases. ----
    s1 = g1 / jnp.sqrt(rv1 + eps)
    c1 = (b1 - rm1) * s1 + be1            # (H,)
    w1f = (w1 * s1[None, :]).astype(f32)  # (D, H)

    s2 = g2 / jnp.sqrt(rv2 + eps)
    c2 = (b2 - rm2) * s2 + be2            # (H,)
    w2f = (w2 * s2[None, :]).astype(f32)  # (H, H)

    c12 = jnp.stack([c1, c2]).astype(f32)                 # (2, H), stays f32

    # ---- Lane-dense output head: pad 5 -> 128 columns. ----
    w3p = jnp.pad(w3, ((0, 0), (0, OP - O))).astype(f32)  # (H, 128)
    b3p = jnp.pad(b3, (0, OP - O), constant_values=-1e30).astype(f32)
    b3p = b3p.reshape(1, OP)

    # ---- Pad the fc1 contraction dim to a multiple of 128 (exact). ----
    D_pad = _round_up(D, 128)
    w1p = jnp.pad(w1f, ((0, D_pad - D), (0, 0)))          # (D_pad, H)

    # ---- Batch tiling: big tiles, padded batch, >=2 grid steps if possible.
    sub = 8 * (4 // jnp.dtype(compute_dtype).itemsize)    # 8 (f32) / 16 (bf16)
    bt = min(_round_up(batch_tile, sub), _round_up(B, sub))
    B_pad = _round_up(B, bt)
    # Give v7x's two TensorCores >=2 parallel grid steps when the batch allows.
    if B_pad // bt < 2 and (B_pad // 2) >= sub and (B_pad // 2) % sub == 0:
        bt = B_pad // 2
    grid = (B_pad // bt,)

    x_p = jnp.pad(x.astype(f32), ((0, B_pad - B), (0, D_pad - D)))

    # Dtype policy fixed here (bf16 on v6e/v7x for MXU peak; biases stay f32).
    x_p = x_p.astype(compute_dtype)
    w1p = w1p.astype(compute_dtype)
    w2c = w2f.astype(compute_dtype)
    w3c = w3p.astype(compute_dtype)

    const = lambda shape: pl.BlockSpec(shape, lambda i: (0, 0))

    out = pl.pallas_call(
        _slnet_kernel,
        out_shape=jax.ShapeDtypeStruct((B_pad, OP), jnp.float32),
        grid=grid,
        in_specs=[
            pl.BlockSpec((bt, D_pad), lambda i: (i, 0)),   # x tile
            const((D_pad, H)),                             # fc1 (BN folded)
            const((H, H)),                                 # fc3 (BN folded)
            const((H, OP)),                                # output head (padded)
            const((2, H)),                                 # folded biases c1, c2
            const((1, OP)),                                # padded output bias
        ],
        out_specs=pl.BlockSpec((bt, OP), lambda i: (i, 0)),
        compiler_params=pltpu.CompilerParams(
            dimension_semantics=("parallel",)),
    )(x_p, w1p, w2c, w3c, c12, b3p)

    return out[:B, :O]


def init_params(key, dim, hidden=512, out=5):
    ks = jax.random.split(key, 8)
    # Deterministic small-scale init (synthetic weights, not a checkpoint).
    w1 = jax.random.normal(ks[0], (dim, hidden), jnp.float32) * 0.05
    b1 = jax.random.normal(ks[1], (hidden,), jnp.float32) * 0.05
    g1 = jnp.ones((hidden,), jnp.float32)
    be1 = jnp.zeros((hidden,), jnp.float32)
    rm1 = jax.random.normal(ks[2], (hidden,), jnp.float32) * 0.01
    rv1 = jnp.ones((hidden,), jnp.float32)

    w2 = jax.random.normal(ks[3], (hidden, hidden), jnp.float32) * 0.05
    b2 = jax.random.normal(ks[4], (hidden,), jnp.float32) * 0.05
    g2 = jnp.ones((hidden,), jnp.float32)
    be2 = jnp.zeros((hidden,), jnp.float32)
    rm2 = jax.random.normal(ks[5], (hidden,), jnp.float32) * 0.01
    rv2 = jnp.ones((hidden,), jnp.float32)

    w3 = jax.random.normal(ks[6], (hidden, out), jnp.float32) * 0.05
    b3 = jax.random.normal(ks[7], (out,), jnp.float32) * 0.05
    return (w1, b1, g1, be1, rm1, rv1,
            w2, b2, g2, be2, rm2, rv2,
            w3, b3)


def _reference(x, params):
    (w1, b1, g1, be1, rm1, rv1,
     w2, b2, g2, be2, rm2, rv2,
     w3, b3) = params
    eps = 1e-5
    h = x @ w1 + b1
    h = jnp.maximum((h - rm1) / jnp.sqrt(rv1 + eps) * g1 + be1, 0.0)
    h = h @ w2 + b2
    h = jnp.maximum((h - rm2) / jnp.sqrt(rv2 + eps) * g2 + be2, 0.0)
    logits = h @ w3 + b3
    return jax.nn.log_softmax(logits, axis=1)


if __name__ == "__main__":
    key = jax.random.PRNGKey(0)
    k_x, k_p = jax.random.split(key)

    B, DIM = 8, 64          # batch=8, dim_obs=64 (arguments.dim_obs stand-in)
    x = jax.random.normal(k_x, (B, DIM), jnp.float32)
    params = init_params(k_p, DIM)

    ref = _reference(x, params)

    # f32 compute path (exact folding): tight check vs JAX reference.
    out = jax.block_until_ready(slnet_forward(x, params))
    assert out.shape == (B, 5)
    assert jnp.allclose(out, ref, atol=1e-4, rtol=1e-4), "f32 mismatch vs reference"

    # bf16 compute path (v6e / v7x MXU fast path): looser tolerance.
    out_bf16 = jax.block_until_ready(
        slnet_forward(x, params, compute_dtype=jnp.bfloat16))
    assert out_bf16.shape == (B, 5)
    assert jnp.allclose(out_bf16, ref, atol=5e-2, rtol=5e-2), "bf16 mismatch vs reference"

    print("KERNEL_OK")
</pallas_src>

<mosaic_0001>
module attributes {stable_mosaic.version = 11 : i64} {
  func.func @_slnet_kernel(%arg0: i32, %arg1: memref<8x128xf32, #tpu.memory_space<vmem>>, %arg2: memref<128x512xf32, #tpu.memory_space<vmem>>, %arg3: memref<512x512xf32, #tpu.memory_space<vmem>>, %arg4: memref<512x128xf32, #tpu.memory_space<vmem>>, %arg5: memref<2x512xf32, #tpu.memory_space<vmem>>, %arg6: memref<1x128xf32, #tpu.memory_space<vmem>>, %arg7: memref<8x128xf32, #tpu.memory_space<vmem>>) attributes {dimension_semantics = [#tpu.dimension_semantics<parallel>], iteration_bounds = array<i64: 1>, scalar_prefetch = 0 : i64, scratch_operands = 0 : i64, tpu.core_type = #tpu.core_type<tc>, window_params = [{transform_indices = @transform_0, window_bounds = array<i64: 8, 128>}, {pipeline_mode = #tpu.pipeline_mode<synchronous>, transform_indices = @transform_1, window_bounds = array<i64: 128, 512>}, {pipeline_mode = #tpu.pipeline_mode<synchronous>, transform_indices = @transform_2, window_bounds = array<i64: 512, 512>}, {pipeline_mode = #tpu.pipeline_mode<synchronous>, transform_indices = @transform_3, window_bounds = array<i64: 512, 128>}, {pipeline_mode = #tpu.pipeline_mode<synchronous>, transform_indices = @transform_4, window_bounds = array<i64: 2, 512>}, {pipeline_mode = #tpu.pipeline_mode<synchronous>, transform_indices = @transform_5, window_bounds = array<i64: 1, 128>}, {transform_indices = @transform_6, window_bounds = array<i64: 8, 128>}]} {
    %c0 = arith.constant 0 : index
    %c0_0 = arith.constant 0 : index
    %0 = vector.load %arg1[%c0, %c0_0] : memref<8x128xf32, #tpu.memory_space<vmem>>, vector<8x128xf32>
    %c0_1 = arith.constant 0 : index
    %c0_2 = arith.constant 0 : index
    %1 = vector.load %arg5[%c0_1, %c0_2] : memref<2x512xf32, #tpu.memory_space<vmem>>, vector<2x512xf32>
    %c0_3 = arith.constant 0 : index
    %c0_4 = arith.constant 0 : index
    %2 = vector.load %arg2[%c0_3, %c0_4] : memref<128x512xf32, #tpu.memory_space<vmem>>, vector<128x512xf32>
    %cst = arith.constant dense<0.000000e+00> : vector<8x512xf32>
    %3 = tpu.matmul %0, %2, %cst {dimension_numbers = #tpu.dot_dimension_numbers<[1], [0], [0], [1], [0, 0, 1, 1], [], []>} : vector<8x128xf32>, vector<128x512xf32>, vector<8x512xf32> -> vector<8x512xf32>
    %4 = vector.extract_strided_slice %1 {offsets = [0, 0], sizes = [1, 512], strides = [1, 1]} : vector<2x512xf32> to vector<1x512xf32>
    %5 = vector.broadcast %4 : vector<1x512xf32> to vector<8x512xf32>
    %6 = arith.addf %3, %5 : vector<8x512xf32>
    %cst_5 = arith.constant 0.000000e+00 : f32
    %7 = vector.broadcast %cst_5 : f32 to vector<8x512xf32>
    %8 = arith.maximumf %6, %7 : vector<8x512xf32>
    %c0_6 = arith.constant 0 : index
    %c0_7 = arith.constant 0 : index
    %9 = vector.load %arg3[%c0_6, %c0_7] : memref<512x512xf32, #tpu.memory_space<vmem>>, vector<512x512xf32>
    %cst_8 = arith.constant dense<0.000000e+00> : vector<8x512xf32>
    %10 = tpu.matmul %8, %9, %cst_8 {dimension_numbers = #tpu.dot_dimension_numbers<[1], [0], [0], [1], [0, 0, 1, 1], [], []>} : vector<8x512xf32>, vector<512x512xf32>, vector<8x512xf32> -> vector<8x512xf32>
    %11 = vector.extract_strided_slice %1 {offsets = [1, 0], sizes = [1, 512], strides = [1, 1]} : vector<2x512xf32> to vector<1x512xf32>
    %12 = vector.broadcast %11 : vector<1x512xf32> to vector<8x512xf32>
    %13 = arith.addf %10, %12 : vector<8x512xf32>
    %cst_9 = arith.constant 0.000000e+00 : f32
    %14 = vector.broadcast %cst_9 : f32 to vector<8x512xf32>
    %15 = arith.maximumf %13, %14 : vector<8x512xf32>
    %c0_10 = arith.constant 0 : index
    %c0_11 = arith.constant 0 : index
    %16 = vector.load %arg4[%c0_10, %c0_11] : memref<512x128xf32, #tpu.memory_space<vmem>>, vector<512x128xf32>
    %cst_12 = arith.constant dense<0.000000e+00> : vector<8x128xf32>
    %17 = tpu.matmul %15, %16, %cst_12 {dimension_numbers = #tpu.dot_dimension_numbers<[1], [0], [0], [1], [0, 0, 1, 1], [], []>} : vector<8x512xf32>, vector<512x128xf32>, vector<8x128xf32> -> vector<8x128xf32>
    %c0_13 = arith.constant 0 : index
    %c0_14 = arith.constant 0 : index
    %18 = vector.load %arg6[%c0_13, %c0_14] : memref<1x128xf32, #tpu.memory_space<vmem>>, vector<1x128xf32>
    %19 = vector.broadcast %18 : vector<1x128xf32> to vector<8x128xf32>
    %20 = arith.addf %17, %19 : vector<8x128xf32>
    %cst_15 = arith.constant dense<0xFF800000> : vector<8xf32>
    %21 = vector.multi_reduction <maximumf>, %20, %cst_15 [1] : vector<8x128xf32> to vector<8xf32>
    %22 = vector.shape_cast %21 : vector<8xf32> to vector<8x1xf32>
    %23 = vector.broadcast %22 : vector<8x1xf32> to vector<8x128xf32>
    %24 = arith.subf %20, %23 : vector<8x128xf32>
    %25 = math.exp %24 : vector<8x128xf32>
    %cst_16 = arith.constant dense<0.000000e+00> : vector<8xf32>
    %26 = vector.multi_reduction <add>, %25, %cst_16 [1] : vector<8x128xf32> to vector<8xf32>
    %27 = vector.shape_cast %26 : vector<8xf32> to vector<8x1xf32>
    %28 = math.log %27 : vector<8x1xf32>
    %29 = vector.broadcast %28 : vector<8x1xf32> to vector<8x128xf32>
    %30 = arith.subf %24, %29 : vector<8x128xf32>
    %c0_17 = arith.constant 0 : index
    %c0_18 = arith.constant 0 : index
    %31 = vector.load %arg7[%c0_17, %c0_18] : memref<8x128xf32, #tpu.memory_space<vmem>>, vector<8x128xf32>
    tpu.vector_store %arg7[%c0_17, %c0_18], %30 {strides = array<i32>} : memref<8x128xf32, #tpu.memory_space<vmem>>, vector<8x128xf32>,
    return
  }
  func.func @transform_0(%arg0: i32) -> (i32, i32) {
    %c0_i32 = arith.constant 0 : i32
    %c0_i32_0 = arith.constant 0 : i32
    return %arg0, %c0_i32 : i32, i32
  }
  func.func @transform_1(%arg0: i32) -> (i32, i32) {
    %c0_i32 = arith.constant 0 : i32
    %c0_i32_0 = arith.constant 0 : i32
    %c0_i32_1 = arith.constant 0 : i32
    return %c0_i32, %c0_i32_0 : i32, i32
  }
  func.func @transform_2(%arg0: i32) -> (i32, i32) {
    %c0_i32 = arith.constant 0 : i32
    %c0_i32_0 = arith.constant 0 : i32
    %c0_i32_1 = arith.constant 0 : i32
    return %c0_i32, %c0_i32_0 : i32, i32
  }
  func.func @transform_3(%arg0: i32) -> (i32, i32) {
    %c0_i32 = arith.constant 0 : i32
    %c0_i32_0 = arith.constant 0 : i32
    %c0_i32_1 = arith.constant 0 : i32
    return %c0_i32, %c0_i32_0 : i32, i32
  }
  func.func @transform_4(%arg0: i32) -> (i32, i32) {
    %c0_i32 = arith.constant 0 : i32
    %c0_i32_0 = arith.constant 0 : i32
    %c0_i32_1 = arith.constant 0 : i32
    return %c0_i32, %c0_i32_0 : i32, i32
  }
  func.func @transform_5(%arg0: i32) -> (i32, i32) {
    %c0_i32 = arith.constant 0 : i32
    %c0_i32_0 = arith.constant 0 : i32
    %c0_i32_1 = arith.constant 0 : i32
    return %c0_i32, %c0_i32_0 : i32, i32
  }
  func.func @transform_6(%arg0: i32) -> (i32, i32) {
    %c0_i32 = arith.constant 0 : i32
    %c0_i32_0 = arith.constant 0 : i32
    return %arg0, %c0_i32 : i32, i32
  }
}

</mosaic_0001>

<bundles_post_ra>
// kernel: tpu_custom_call.1
= control target key start
LH: loop header
LB: loop body
LE: loop exit
PB: predicated region body
PF: predicated region fallthrough
CT: control target
= control target key end

     0   :  { %11 = vsyncpa [#allocation3], 0  ;;  %s1298_s0 = inlined_call_operand.hbm [shape: f32[8,128], index: 0, kind: input, shape index: {}]   ;;  %s1299_s1 = inlined_call_operand.hbm [shape: f32[128,512], index: 1, kind: input, shape index: {}]   ;;  %s1300_s2 = inlined_call_operand.hbm [shape: f32[512,512], index: 2, kind: input, shape index: {}]   ;;  %s1301_s3 = inlined_call_operand.hbm [shape: f32[512,128], index: 3, kind: input, shape index: {}]   ;;  %s1302_s4 = inlined_call_operand.hbm [shape: f32[2,512], index: 4, kind: input, shape index: {}]   ;;  %s1303_s5 = inlined_call_operand.vmem [shape: f32[1,128], index: 5, kind: input, shape index: {}]   ;;  %s1304_s6 = inlined_call_operand.hbm [shape: f32[8,128], index: 6, kind: output, shape index: {}]  }
   0x1   :  { %12 = vsyncpa [#allocation6], 0 }
   0x2   :  { %13 = vsyncpa [#allocation9], 0  ;;  %s30_s23 = sshll.u32 %s1299_s1, 4  ;;  %s31_s23 = int_to_ptr.hbm [resolvable:$true] %s30_s23 }
   0x3   :  { %14 = vsyncpa [#allocation4], 0  ;;  %s1198_s24 = smov [#allocation5]   ;;  %s56_s28 = sshll.u32 %s1301_s3, 4  ;;  %s57_s28 = int_to_ptr.hbm [resolvable:$true] %s56_s28 }
   0x4   :  { %s32_s25 = sshll.u32 %s1198_s24, 4  ;;  %s1199_s29 = smov 512   ;;  %s33_s25 = int_to_ptr.vmem [resolvable:$true] %s32_s25 }
   0x5   :  { %s1200_s30 = smov 32   ;;  %s1201_s7 = smov [#allocation8]  }
   0x6   :  { %38 = dma.hbm_to_vmem [thread:$0]  %s31_s23, 8192, %s33_s25, [#allocation6], %s1199_s29, %s1199_s29, %s1200_s30  }
   0x7   :  { %s58_s8 = sshll.u32 %s1201_s7, 4  ;;  %s1202_s9 = smov 128   ;;  %s59_s8 = int_to_ptr.vmem [resolvable:$true] %s58_s8 }
   0x8   :  { %s1203_s10 = smov 8   ;;  %s20_s12 = sshll.u32 %s1298_s0, 4  ;;  %s21_s12 = int_to_ptr.hbm [resolvable:$true] %s20_s12 }
   0x9   :  { %64 = dma.hbm_to_vmem [thread:$0]  %s57_s28, 8192, %s59_s8, [#allocation9], %s1202_s9, %s1202_s9, %s1203_s10  }
   0xa   :  { %s1204_s13 = smov [#allocation2]   ;;  %s43_s16 = sshll.u32 %s1300_s2, 4  ;;  %s44_s16 = int_to_ptr.hbm [resolvable:$true] %s43_s16 }
   0xb   :  { %s22_s14 = sshll.u32 %s1204_s13, 4  ;;  %s1205_s17 = smov [#allocation7]   ;;  %s23_s14 = int_to_ptr.vmem [resolvable:$true] %s22_s14 }
   0xc   :  { %25 = dma.hbm_to_vmem [thread:$0]  %s21_s12, 128, %s23_s14, [#allocation3]  }
   0xd   :  { %s45_s18 = sshll.u32 %s1205_s17, 4  ;;  %s70_s21 = sshll.u32 %s1302_s4, 4  ;;  %s46_s18 = int_to_ptr.vmem [resolvable:$true] %s45_s18  ;;  %s71_s21 = int_to_ptr.hbm [resolvable:$true] %s70_s21 }
   0xe   :  { %51 = dma.hbm_to_vmem [thread:$0]  %s44_s16, 32768, %s46_s18, [#allocation6], %s1199_s29, %s1199_s29, %s1200_s30  }
   0xf   :  { %s1206_s0 = smov [#allocation10]  }
  0x10   :  { %s72_s22 = sshll.u32 %s1206_s0, 4  ;;  %s73_s22 = int_to_ptr.vmem [resolvable:$true] %s72_s22 }
  0x11   :  { %75 = dma.hbm_to_vmem [thread:$0]  %s71_s21, 128, %s73_s22, [#allocation9]  }
  0x12   :  { %1190 = dma.done.wait [#allocation3], 128  }
  0x13   :  { %1191 = vsyncadd [#allocation3], 4294967168 }
  0x14   :  { %1192 = dma.done.wait [#allocation6], 40960  }
  0x15   :  { %1193 = vsyncadd [#allocation6], 4294926336 }
  0x16   :  { %1194 = dma.done.wait [#allocation9], 8320  }
  0x17   :  { %1195 = vsyncadd [#allocation9], 4294958976  ;;  %v160_v0 = vld [vmem:[#allocation5 + $0x1e0] sm:$0xff]  ;;  %v161_v1 = vld [vmem:[#allocation5 + $0x1e8] sm:$0xff]  ;;  %s1207_s23 = smov [#allocation11]   ;;  %s1019_s26 = sshll.u32 %s1304_s6, 4  ;;  %s1020_s26 = int_to_ptr.hbm [resolvable:$true] %s1019_s26 }
  0x18   :  { %v162_v2 = vld [vmem:[#allocation5 + $0x1f0] sm:$0xff]  ;;  %177 = vmatpush.msra.mxu0 %v160_v0  ;;  %197 = vmatpush.msra.mxu1 %v161_v1  ;;  %v163_v3 = vld [vmem:[#allocation5 + $0x1f8] sm:$0xff]  ;;  %v156_v4 = vld [vmem:[#allocation5 + $0x1c0] sm:$0xff] }
  0x19   :  { %v157_v5 = vld [vmem:[#allocation5 + $0x1c8] sm:$0xff]  ;;  %217 = vmatpush.msra.mxu2 %v162_v2  ;;  %237 = vmatpush.msra.mxu3 %v163_v3  ;;  %v158_v6 = vld [vmem:[#allocation5 + $0x1d0] sm:$0xff]  ;;  %v159_v7 = vld [vmem:[#allocation5 + $0x1d8] sm:$0xff] }
  0x1a   :  { %v152_v8 = vld [vmem:[#allocation5 + $0x1a0] sm:$0xff]  ;;  %178 = vmatpush.msra.mxu0 %v156_v4  ;;  %198 = vmatpush.msra.mxu1 %v157_v5  ;;  %v153_v9 = vld [vmem:[#allocation5 + $0x1a8] sm:$0xff]  ;;  %v154_v10 = vld [vmem:[#allocation5 + $0x1b0] sm:$0xff] }
  0x1b   :  { %v155_v11 = vld [vmem:[#allocation5 + $0x1b8] sm:$0xff]  ;;  %218 = vmatpush.msra.mxu2 %v158_v6  ;;  %238 = vmatpush.msra.mxu3 %v159_v7  ;;  %v148_v12 = vld [vmem:[#allocation5 + $0x180] sm:$0xff]  ;;  %v149_v13 = vld [vmem:[#allocation5 + $0x188] sm:$0xff] }
  0x1c   :  { %179 = vmatpush.msra.mxu0 %v152_v8  ;;  %199 = vmatpush.msra.mxu1 %v153_v9  ;;  %v150_v14 = vld [vmem:[#allocation5 + $0x190] sm:$0xff]  ;;  %v151_v15 = vld [vmem:[#allocation5 + $0x198] sm:$0xff]  ;;  %v144_v16 = vld [vmem:[#allocation5 + $0x160] sm:$0xff] }
  0x1d   :  { %219 = vmatpush.msra.mxu2 %v154_v10  ;;  %239 = vmatpush.msra.mxu3 %v155_v11  ;;  %v145_v17 = vld [vmem:[#allocation5 + $0x168] sm:$0xff]  ;;  %v146_v18 = vld [vmem:[#allocation5 + $0x170] sm:$0xff]  ;;  %v147_v19 = vld [vmem:[#allocation5 + $0x178] sm:$0xff] }
  0x1e   :  { %180 = vmatpush.msra.mxu0 %v148_v12  ;;  %200 = vmatpush.msra.mxu1 %v149_v13  ;;  %v140_v20 = vld [vmem:[#allocation5 + $0x140] sm:$0xff]  ;;  %v141_v21 = vld [vmem:[#allocation5 + $0x148] sm:$0xff]  ;;  %v142_v22 = vld [vmem:[#allocation5 + $0x150] sm:$0xff] }
  0x1f   :  { %220 = vmatpush.msra.mxu2 %v150_v14  ;;  %240 = vmatpush.msra.mxu3 %v151_v15  ;;  %v143_v23 = vld [vmem:[#allocation5 + $0x158] sm:$0xff]  ;;  %v136_v24 = vld [vmem:[#allocation5 + $0x120] sm:$0xff]  ;;  %v137_v25 = vld [vmem:[#allocation5 + $0x128] sm:$0xff] }
  0x20   :  { %181 = vmatpush.msra.mxu0 %v144_v16  ;;  %201 = vmatpush.msra.mxu1 %v145_v17  ;;  %v138_v26 = vld [vmem:[#allocation5 + $0x130] sm:$0xff]  ;;  %v139_v27 = vld [vmem:[#allocation5 + $0x138] sm:$0xff]  ;;  %v132_v28 = vld [vmem:[#allocation5 + $0x100] sm:$0xff] }
  0x21   :  { %221 = vmatpush.msra.mxu2 %v146_v18  ;;  %241 = vmatpush.msra.mxu3 %v147_v19  ;;  %v133_v29 = vld [vmem:[#allocation5 + $0x108] sm:$0xff]  ;;  %v134_v30 = vld [vmem:[#allocation5 + $0x110] sm:$0xff]  ;;  %v135_v31 = vld [vmem:[#allocation5 + $0x118] sm:$0xff] }
  0x22   :  { %182 = vmatpush.msra.mxu0 %v140_v20  ;;  %202 = vmatpush.msra.mxu1 %v141_v21  ;;  %v128_v32 = vld [vmem:[#allocation5 + $0xe0] sm:$0xff]  ;;  %v129_v33 = vld [vmem:[#allocation5 + $0xe8] sm:$0xff]  ;;  %v130_v34 = vld [vmem:[#allocation5 + $0xf0] sm:$0xff] }
  0x23   :  { %222 = vmatpush.msra.mxu2 %v142_v22  ;;  %242 = vmatpush.msra.mxu3 %v143_v23  ;;  %v131_v35 = vld [vmem:[#allocation5 + $0xf8] sm:$0xff]  ;;  %v124_v36 = vld [vmem:[#allocation5 + $0xc0] sm:$0xff]  ;;  %v125_v37 = vld [vmem:[#allocation5 + $0xc8] sm:$0xff] }
  0x24   :  { %183 = vmatpush.msra.mxu0 %v136_v24  ;;  %203 = vmatpush.msra.mxu1 %v137_v25  ;;  %v126_v38 = vld [vmem:[#allocation5 + $0xd0] sm:$0xff]  ;;  %v127_v39 = vld [vmem:[#allocation5 + $0xd8] sm:$0xff]  ;;  %v120_v40 = vld [vmem:[#allocation5 + $0xa0] sm:$0xff] }
  0x25   :  { %223 = vmatpush.msra.mxu2 %v138_v26  ;;  %243 = vmatpush.msra.mxu3 %v139_v27  ;;  %v121_v41 = vld [vmem:[#allocation5 + $0xa8] sm:$0xff]  ;;  %v122_v42 = vld [vmem:[#allocation5 + $0xb0] sm:$0xff]  ;;  %v123_v43 = vld [vmem:[#allocation5 + $0xb8] sm:$0xff] }
  0x26   :  { %184 = vmatpush.msra.mxu0 %v132_v28  ;;  %204 = vmatpush.msra.mxu1 %v133_v29  ;;  %v116_v44 = vld [vmem:[#allocation5 + $0x80] sm:$0xff]  ;;  %v117_v45 = vld [vmem:[#allocation5 + $0x88] sm:$0xff]  ;;  %v118_v46 = vld [vmem:[#allocation5 + $0x90] sm:$0xff] }
  0x27   :  { %224 = vmatpush.msra.mxu2 %v134_v30  ;;  %244 = vmatpush.msra.mxu3 %v135_v31  ;;  %v119_v47 = vld [vmem:[#allocation5 + $0x98] sm:$0xff]  ;;  %v112_v48 = vld [vmem:[#allocation5 + $0x60] sm:$0xff]  ;;  %v113_v49 = vld [vmem:[#allocation5 + $0x68] sm:$0xff] }
  0x28   :  { %185 = vmatpush.msra.mxu0 %v128_v32  ;;  %205 = vmatpush.msra.mxu1 %v129_v33  ;;  %v114_v50 = vld [vmem:[#allocation5 + $0x70] sm:$0xff]  ;;  %v115_v51 = vld [vmem:[#allocation5 + $0x78] sm:$0xff]  ;;  %v108_v52 = vld [vmem:[#allocation5 + $0x40] sm:$0xff] }
  0x29   :  { %225 = vmatpush.msra.mxu2 %v130_v34  ;;  %245 = vmatpush.msra.mxu3 %v131_v35  ;;  %v109_v53 = vld [vmem:[#allocation5 + $0x48] sm:$0xff]  ;;  %v110_v54 = vld [vmem:[#allocation5 + $0x50] sm:$0xff]  ;;  %v111_v55 = vld [vmem:[#allocation5 + $0x58] sm:$0xff] }
  0x2a   :  { %186 = vmatpush.msra.mxu0 %v124_v36  ;;  %206 = vmatpush.msra.mxu1 %v125_v37  ;;  %v104_v56 = vld [vmem:[#allocation5 + $0x20] sm:$0xff]  ;;  %v105_v57 = vld [vmem:[#allocation5 + $0x28] sm:$0xff]  ;;  %v106_v58 = vld [vmem:[#allocation5 + $0x30] sm:$0xff] }
  0x2b   :  { %226 = vmatpush.msra.mxu2 %v126_v38  ;;  %246 = vmatpush.msra.mxu3 %v127_v39  ;;  %v107_v59 = vld [vmem:[#allocation5 + $0x38] sm:$0xff]  ;;  %v100_v60 = vld [vmem:[#allocation5] sm:$0xff]  ;;  %v101_v61 = vld [vmem:[#allocation5 + $0x8] sm:$0xff] }
  0x2c   :  { %187 = vmatpush.msra.mxu0 %v120_v40  ;;  %207 = vmatpush.msra.mxu1 %v121_v41  ;;  %v102_v62 = vld [vmem:[#allocation5 + $0x10] sm:$0xff]  ;;  %v103_v63 = vld [vmem:[#allocation5 + $0x18] sm:$0xff]  ;;  %v321_v1 = vld [vmem:[#allocation7 + $0x1e0] sm:$0xff] }
  0x2d   :  { %227 = vmatpush.msra.mxu2 %v122_v42  ;;  %247 = vmatpush.msra.mxu3 %v123_v43  ;;  %v98_v0 = vld [vmem:[#allocation2] sm:$0xff]  ;;  %v385_v2 = vld [vmem:[#allocation7 + $0x3e0] sm:$0xff] }
  0x2e   :  { %188 = vmatpush.msra.mxu0 %v116_v44  ;;  %208 = vmatpush.msra.mxu1 %v117_v45  ;;  %v449_v3 = vld [vmem:[#allocation7 + $0x5e0] sm:$0xff] }
  0x2f   :  { %228 = vmatpush.msra.mxu2 %v118_v46  ;;  %248 = vmatpush.msra.mxu3 %v119_v47  ;;  %v513_v4 = vld [vmem:[#allocation7 + $0x7e0] sm:$0xff] }
  0x30   :  { %189 = vmatpush.msra.mxu0 %v112_v48  ;;  %209 = vmatpush.msra.mxu1 %v113_v49  ;;  %v317_v5 = vld [vmem:[#allocation7 + $0x1c0] sm:$0xff] }
  0x31   :  { %229 = vmatpush.msra.mxu2 %v114_v50  ;;  %249 = vmatpush.msra.mxu3 %v115_v51  ;;  %v381_v6 = vld [vmem:[#allocation7 + $0x3c0] sm:$0xff] }
  0x32   :  { %190 = vmatpush.msra.mxu0 %v108_v52  ;;  %210 = vmatpush.msra.mxu1 %v109_v53  ;;  %v445_v7 = vld [vmem:[#allocation7 + $0x5c0] sm:$0xff] }
  0x33   :  { %230 = vmatpush.msra.mxu2 %v110_v54  ;;  %250 = vmatpush.msra.mxu3 %v111_v55  ;;  %v509_v8 = vld [vmem:[#allocation7 + $0x7c0] sm:$0xff] }
  0x34   :  { %191 = vmatpush.msra.mxu0 %v104_v56  ;;  %211 = vmatpush.msra.mxu1 %v105_v57  ;;  %v313_v9 = vld [vmem:[#allocation7 + $0x1a0] sm:$0xff] }
  0x35   :  { %231 = vmatpush.msra.mxu2 %v106_v58  ;;  %251 = vmatpush.msra.mxu3 %v107_v59  ;;  %v377_v10 = vld [vmem:[#allocation7 + $0x3a0] sm:$0xff] }
  0x36   :  { %192 = vmatpush.msra.mxu0 %v100_v60  ;;  %212 = vmatpush.msra.mxu1 %v101_v61  ;;  %v441_v11 = vld [vmem:[#allocation7 + $0x5a0] sm:$0xff] }
  0x37   :  { %232 = vmatpush.msra.mxu2 %v102_v62  ;;  %252 = vmatpush.msra.mxu3 %v103_v63  ;;  %v505_v12 = vld [vmem:[#allocation7 + $0x7a0] sm:$0xff]  ;;  %v322_v63 = vld [vmem:[#allocation7 + $0x1e8] sm:$0xff] }
  0x38   :  { %193 = vmatmul.f32.vlgmr.msra.gmra.mxu0 %v98_v0  ;;  %213 = vmatmul.f32.vlgmr.msra.gmra.mxu1 %v98_v0  ;;  %v309_v13 = vld [vmem:[#allocation7 + $0x180] sm:$0xff] }
  0x39   :  { %233 = vmatmul.f32.vlgmr.msra.gmra.mxu2 %v98_v0  ;;  %253 = vmatmul.f32.vlgmr.msra.gmra.mxu3 %v98_v0  ;;  %v373_v14 = vld [vmem:[#allocation7 + $0x380] sm:$0xff]  ;;  %v386_v0 = vld [vmem:[#allocation7 + $0x3e8] sm:$0xff] }
  0x3a   :  { %529 = vmatpush.msrb.mxu0 %v321_v1  ;;  %549 = vmatpush.msrb.mxu1 %v385_v2  ;;  %v437_v15 = vld [vmem:[#allocation7 + $0x580] sm:$0xff] }
  0x3b   :  { %569 = vmatpush.msrb.mxu2 %v449_v3  ;;  %589 = vmatpush.msrb.mxu3 %v513_v4  ;;  %v501_v16 = vld [vmem:[#allocation7 + $0x780] sm:$0xff]  ;;  %v318_v3 = vld [vmem:[#allocation7 + $0x1c8] sm:$0xff] }
  0x3c   :  { %530 = vmatpush.msrb.mxu0 %v317_v5  ;;  %550 = vmatpush.msrb.mxu1 %v381_v6  ;;  %v305_v17 = vld [vmem:[#allocation7 + $0x160] sm:$0xff]  ;;  %v382_v4 = vld [vmem:[#allocation7 + $0x3c8] sm:$0xff] }
  0x3d   :  { %570 = vmatpush.msrb.mxu2 %v445_v7  ;;  %590 = vmatpush.msrb.mxu3 %v509_v8  ;;  %v369_v18 = vld [vmem:[#allocation7 + $0x360] sm:$0xff]  ;;  %v450_v5 = vld [vmem:[#allocation7 + $0x5e8] sm:$0xff] }
  0x3e   :  { %531 = vmatpush.msrb.mxu0 %v313_v9  ;;  %551 = vmatpush.msrb.mxu1 %v377_v10  ;;  %v433_v19 = vld [vmem:[#allocation7 + $0x560] sm:$0xff]  ;;  %v514_v6 = vld [vmem:[#allocation7 + $0x7e8] sm:$0xff] }
  0x3f   :  { %571 = vmatpush.msrb.mxu2 %v441_v11  ;;  %591 = vmatpush.msrb.mxu3 %v505_v12  ;;  %v497_v20 = vld [vmem:[#allocation7 + $0x760] sm:$0xff]  ;;  %v314_v7 = vld [vmem:[#allocation7 + $0x1a8] sm:$0xff] }
  0x40   :  { %532 = vmatpush.msrb.mxu0 %v309_v13  ;;  %552 = vmatpush.msrb.mxu1 %v373_v14  ;;  %v301_v21 = vld [vmem:[#allocation7 + $0x140] sm:$0xff]  ;;  %v378_v8 = vld [vmem:[#allocation7 + $0x3a8] sm:$0xff] }
  0x41   :  { %v365_v22 = vld [vmem:[#allocation7 + $0x340] sm:$0xff]  ;;  %572 = vmatpush.msrb.mxu2 %v437_v15  ;;  %592 = vmatpush.msrb.mxu3 %v501_v16  ;;  %v446_v9 = vld [vmem:[#allocation7 + $0x5c8] sm:$0xff] }
  0x42   :  { %533 = vmatpush.msrb.mxu0 %v305_v17  ;;  %553 = vmatpush.msrb.mxu1 %v369_v18  ;;  %v429_v23 = vld [vmem:[#allocation7 + $0x540] sm:$0xff]  ;;  %v510_v10 = vld [vmem:[#allocation7 + $0x7c8] sm:$0xff] }
  0x43   :  { %v493_v24 = vld [vmem:[#allocation7 + $0x740] sm:$0xff]  ;;  %573 = vmatpush.msrb.mxu2 %v433_v19  ;;  %593 = vmatpush.msrb.mxu3 %v497_v20  ;;  %v310_v11 = vld [vmem:[#allocation7 + $0x188] sm:$0xff] }
  0x44   :  { %v297_v25 = vld [vmem:[#allocation7 + $0x120] sm:$0xff]  ;;  %534 = vmatpush.msrb.mxu0 %v301_v21  ;;  %554 = vmatpush.msrb.mxu1 %v365_v22  ;;  %v374_v12 = vld [vmem:[#allocation7 + $0x388] sm:$0xff] }
  0x45   :  { %v361_v26 = vld [vmem:[#allocation7 + $0x320] sm:$0xff]  ;;  %574 = vmatpush.msrb.mxu2 %v429_v23  ;;  %594 = vmatpush.msrb.mxu3 %v493_v24  ;;  %v442_v13 = vld [vmem:[#allocation7 + $0x5a8] sm:$0xff] }
  0x46   :  { %v425_v27 = vld [vmem:[#allocation7 + $0x520] sm:$0xff]  ;;  %535 = vmatpush.msrb.mxu0 %v297_v25  ;;  %555 = vmatpush.msrb.mxu1 %v361_v26  ;;  %v506_v14 = vld [vmem:[#allocation7 + $0x7a8] sm:$0xff] }
  0x47   :  { %v489_v28 = vld [vmem:[#allocation7 + $0x720] sm:$0xff]  ;;  %575 = vmatpush.msrb.mxu2 %v425_v27  ;;  %v306_v15 = vld [vmem:[#allocation7 + $0x168] sm:$0xff] }
  0x48   :  { %v293_v29 = vld [vmem:[#allocation7 + $0x100] sm:$0xff]  ;;  %595 = vmatpush.msrb.mxu3 %v489_v28  ;;  %v370_v16 = vld [vmem:[#allocation7 + $0x368] sm:$0xff] }
  0x49   :  { %v357_v30 = vld [vmem:[#allocation7 + $0x300] sm:$0xff]  ;;  %536 = vmatpush.msrb.mxu0 %v293_v29  ;;  %v438_v17 = vld [vmem:[#allocation7 + $0x588] sm:$0xff] }
  0x4a   :  { %v421_v31 = vld [vmem:[#allocation7 + $0x500] sm:$0xff]  ;;  %556 = vmatpush.msrb.mxu1 %v357_v30  ;;  %v502_v18 = vld [vmem:[#allocation7 + $0x788] sm:$0xff] }
  0x4b   :  { %v485_v32 = vld [vmem:[#allocation7 + $0x700] sm:$0xff]  ;;  %576 = vmatpush.msrb.mxu2 %v421_v31  ;;  %v302_v19 = vld [vmem:[#allocation7 + $0x148] sm:$0xff] }
  0x4c   :  { %v289_v33 = vld [vmem:[#allocation7 + $0xe0] sm:$0xff]  ;;  %596 = vmatpush.msrb.mxu3 %v485_v32  ;;  %v366_v20 = vld [vmem:[#allocation7 + $0x348] sm:$0xff] }
  0x4d   :  { %v353_v34 = vld [vmem:[#allocation7 + $0x2e0] sm:$0xff]  ;;  %537 = vmatpush.msrb.mxu0 %v289_v33  ;;  %v434_v21 = vld [vmem:[#allocation7 + $0x568] sm:$0xff] }
  0x4e   :  { %v417_v35 = vld [vmem:[#allocation7 + $0x4e0] sm:$0xff]  ;;  %557 = vmatpush.msrb.mxu1 %v353_v34  ;;  %v498_v22 = vld [vmem:[#allocation7 + $0x768] sm:$0xff] }
  0x4f   :  { %v481_v36 = vld [vmem:[#allocation7 + $0x6e0] sm:$0xff]  ;;  %577 = vmatpush.msrb.mxu2 %v417_v35  ;;  %v298_v23 = vld [vmem:[#allocation7 + $0x128] sm:$0xff] }
  0x50   :  { %v285_v37 = vld [vmem:[#allocation7 + $0xc0] sm:$0xff]  ;;  %597 = vmatpush.msrb.mxu3 %v481_v36  ;;  %v362_v24 = vld [vmem:[#allocation7 + $0x328] sm:$0xff] }
  0x51   :  { %v349_v38 = vld [vmem:[#allocation7 + $0x2c0] sm:$0xff]  ;;  %538 = vmatpush.msrb.mxu0 %v285_v37  ;;  %v430_v25 = vld [vmem:[#allocation7 + $0x548] sm:$0xff] }
  0x52   :  { %v413_v39 = vld [vmem:[#allocation7 + $0x4c0] sm:$0xff]  ;;  %558 = vmatpush.msrb.mxu1 %v349_v38  ;;  %v494_v26 = vld [vmem:[#allocation7 + $0x748] sm:$0xff] }
  0x53   :  { %v477_v40 = vld [vmem:[#allocation7 + $0x6c0] sm:$0xff]  ;;  %578 = vmatpush.msrb.mxu2 %v413_v39  ;;  %v294_v27 = vld [vmem:[#allocation7 + $0x108] sm:$0xff] }
  0x54   :  { %v281_v41 = vld [vmem:[#allocation7 + $0xa0] sm:$0xff]  ;;  %598 = vmatpush.msrb.mxu3 %v477_v40  ;;  %v358_v28 = vld [vmem:[#allocation7 + $0x308] sm:$0xff] }
  0x55   :  { %v345_v42 = vld [vmem:[#allocation7 + $0x2a0] sm:$0xff]  ;;  %539 = vmatpush.msrb.mxu0 %v281_v41  ;;  %v426_v29 = vld [vmem:[#allocation7 + $0x528] sm:$0xff] }
  0x56   :  { %v409_v43 = vld [vmem:[#allocation7 + $0x4a0] sm:$0xff]  ;;  %559 = vmatpush.msrb.mxu1 %v345_v42  ;;  %v490_v30 = vld [vmem:[#allocation7 + $0x728] sm:$0xff] }
  0x57   :  { %v473_v44 = vld [vmem:[#allocation7 + $0x6a0] sm:$0xff]  ;;  %579 = vmatpush.msrb.mxu2 %v409_v43  ;;  %v290_v31 = vld [vmem:[#allocation7 + $0xe8] sm:$0xff] }
  0x58   :  { %v277_v45 = vld [vmem:[#allocation7 + $0x80] sm:$0xff]  ;;  %599 = vmatpush.msrb.mxu3 %v473_v44  ;;  %v354_v32 = vld [vmem:[#allocation7 + $0x2e8] sm:$0xff] }
  0x59   :  { %v341_v46 = vld [vmem:[#allocation7 + $0x280] sm:$0xff]  ;;  %540 = vmatpush.msrb.mxu0 %v277_v45  ;;  %v422_v33 = vld [vmem:[#allocation7 + $0x508] sm:$0xff] }
  0x5a   :  { %v405_v47 = vld [vmem:[#allocation7 + $0x480] sm:$0xff]  ;;  %560 = vmatpush.msrb.mxu1 %v341_v46  ;;  %v486_v34 = vld [vmem:[#allocation7 + $0x708] sm:$0xff] }
  0x5b   :  { %v469_v48 = vld [vmem:[#allocation7 + $0x680] sm:$0xff]  ;;  %580 = vmatpush.msrb.mxu2 %v405_v47  ;;  %v286_v35 = vld [vmem:[#allocation7 + $0xc8] sm:$0xff] }
  0x5c   :  { %v273_v49 = vld [vmem:[#allocation7 + $0x60] sm:$0xff]  ;;  %600 = vmatpush.msrb.mxu3 %v469_v48  ;;  %v350_v36 = vld [vmem:[#allocation7 + $0x2c8] sm:$0xff] }
  0x5d   :  { %v337_v50 = vld [vmem:[#allocation7 + $0x260] sm:$0xff]  ;;  %541 = vmatpush.msrb.mxu0 %v273_v49  ;;  %v418_v37 = vld [vmem:[#allocation7 + $0x4e8] sm:$0xff] }
  0x5e   :  { %v401_v51 = vld [vmem:[#allocation7 + $0x460] sm:$0xff]  ;;  %561 = vmatpush.msrb.mxu1 %v337_v50  ;;  %v482_v38 = vld [vmem:[#allocation7 + $0x6e8] sm:$0xff] }
  0x5f   :  { %v465_v52 = vld [vmem:[#allocation7 + $0x660] sm:$0xff]  ;;  %581 = vmatpush.msrb.mxu2 %v401_v51  ;;  %v282_v39 = vld [vmem:[#allocation7 + $0xa8] sm:$0xff] }
  0x60   :  { %v269_v53 = vld [vmem:[#allocation7 + $0x40] sm:$0xff]  ;;  %601 = vmatpush.msrb.mxu3 %v465_v52  ;;  %v346_v40 = vld [vmem:[#allocation7 + $0x2a8] sm:$0xff] }
  0x61   :  { %v333_v54 = vld [vmem:[#allocation7 + $0x240] sm:$0xff]  ;;  %542 = vmatpush.msrb.mxu0 %v269_v53  ;;  %v414_v41 = vld [vmem:[#allocation7 + $0x4c8] sm:$0xff] }
  0x62   :  { %v397_v55 = vld [vmem:[#allocation7 + $0x440] sm:$0xff]  ;;  %562 = vmatpush.msrb.mxu1 %v333_v54  ;;  %v478_v42 = vld [vmem:[#allocation7 + $0x6c8] sm:$0xff] }
  0x63   :  { %v461_v56 = vld [vmem:[#allocation7 + $0x640] sm:$0xff]  ;;  %582 = vmatpush.msrb.mxu2 %v397_v55  ;;  %v278_v43 = vld [vmem:[#allocation7 + $0x88] sm:$0xff] }
  0x64   :  { %v265_v57 = vld [vmem:[#allocation7 + $0x20] sm:$0xff]  ;;  %602 = vmatpush.msrb.mxu3 %v461_v56  ;;  %v342_v44 = vld [vmem:[#allocation7 + $0x288] sm:$0xff] }
  0x65   :  { %v329_v58 = vld [vmem:[#allocation7 + $0x220] sm:$0xff]  ;;  %543 = vmatpush.msrb.mxu0 %v265_v57  ;;  %v274_v45 = vld [vmem:[#allocation7 + $0x68] sm:$0xff] }
  0x66   :  { %v393_v59 = vld [vmem:[#allocation7 + $0x420] sm:$0xff]  ;;  %563 = vmatpush.msrb.mxu1 %v329_v58  ;;  %v338_v46 = vld [vmem:[#allocation7 + $0x268] sm:$0xff] }
  0x67   :  { %v457_v60 = vld [vmem:[#allocation7 + $0x620] sm:$0xff]  ;;  %583 = vmatpush.msrb.mxu2 %v393_v59  ;;  %v270_v47 = vld [vmem:[#allocation7 + $0x48] sm:$0xff] }
  0x68   :  { %v261_v61 = vld [vmem:[#allocation7] sm:$0xff]  ;;  %603 = vmatpush.msrb.mxu3 %v457_v60  ;;  %v334_v48 = vld [vmem:[#allocation7 + $0x248] sm:$0xff] }
  0x69   :  { %v325_v62 = vld [vmem:[#allocation7 + $0x200] sm:$0xff]  ;;  %544 = vmatpush.msrb.mxu0 %v261_v61  ;;  %v410_v49 = vld [vmem:[#allocation7 + $0x4a8] sm:$0xff] }
  0x6a   :  { %v389_v1 = vld [vmem:[#allocation7 + $0x400] sm:$0xff]  ;;  %564 = vmatpush.msrb.mxu1 %v325_v62  ;;  %v474_v50 = vld [vmem:[#allocation7 + $0x6a8] sm:$0xff] }
  0x6b   :  { %v453_v2 = vld [vmem:[#allocation7 + $0x600] sm:$0xff]  ;;  %609 = vmatpush.msra.mxu0 %v322_v63  ;;  %584 = vmatpush.msrb.mxu2 %v389_v1  ;;  %v266_v51 = vld [vmem:[#allocation7 + $0x28] sm:$0xff] }
  0x6c   :  { %629 = vmatpush.msra.mxu1 %v386_v0  ;;  %604 = vmatpush.msrb.mxu3 %v453_v2  ;;  %v330_v52 = vld [vmem:[#allocation7 + $0x228] sm:$0xff]  ;;  %v1258_v1 = vld [vmem:[#allocation10] sm:$0xff] }
  0x6d   :  { %610 = vmatpush.msra.mxu0 %v318_v3  ;;  %649 = vmatpush.msra.mxu2 %v450_v5  ;;  %v406_v53 = vld [vmem:[#allocation7 + $0x488] sm:$0xff]  ;;  %v165_v2 = vperm.slane %v1258_v1, 0  ;;  %v166_v3 = vperm.slane %v1258_v1, 2 }
  0x6e   :  { %630 = vmatpush.msra.mxu1 %v382_v4  ;;  %669 = vmatpush.msra.mxu3 %v514_v6  ;;  %v470_v54 = vld [vmem:[#allocation7 + $0x688] sm:$0xff] }
  0x6f   :  { %611 = vmatpush.msra.mxu0 %v314_v7  ;;  %650 = vmatpush.msra.mxu2 %v446_v9  ;;  %v262_v55 = vld [vmem:[#allocation7 + $0x8] sm:$0xff]  ;;  %v173_v4 = vperm.slane %v165_v2, 0  ;;  %v174_v5 = vperm.slane %v166_v3, 0  ;;  %v168_v9 = vperm.slane %v1258_v1, 6  ;;  %v339_v2 = vld [vmem:[#allocation7 + $0x270] sm:$0xff] }
  0x70   :  { %631 = vmatpush.msra.mxu1 %v378_v8  ;;  %670 = vmatpush.msra.mxu3 %v510_v10  ;;  %v326_v56 = vld [vmem:[#allocation7 + $0x208] sm:$0xff]  ;;  %v167_v8 = vperm.slane %v1258_v1, 4  ;;  %v415_v3 = vld [vmem:[#allocation7 + $0x4d0] sm:$0xff] }
  0x71   :  { %612 = vmatpush.msra.mxu0 %v310_v11  ;;  %651 = vmatpush.msra.mxu2 %v442_v13  ;;  %v402_v57 = vld [vmem:[#allocation7 + $0x468] sm:$0xff] }
  0x72   :  { %632 = vmatpush.msra.mxu1 %v374_v12  ;;  %671 = vmatpush.msra.mxu3 %v506_v14  ;;  %v466_v58 = vld [vmem:[#allocation7 + $0x668] sm:$0xff]  ;;  %v323_v14 = vld [vmem:[#allocation7 + $0x1f0] sm:$0xff] }
  0x73   :  { %613 = vmatpush.msra.mxu0 %v306_v15  ;;  %652 = vmatpush.msra.mxu2 %v438_v17  ;;  %v398_v59 = vld [vmem:[#allocation7 + $0x448] sm:$0xff]  ;;  %v387_v15 = vld [vmem:[#allocation7 + $0x3f0] sm:$0xff]  ;;  %v176_v17 = vperm.slane %v168_v9, 0 }
  0x74   :  { %633 = vmatpush.msra.mxu1 %v370_v16  ;;  %672 = vmatpush.msra.mxu3 %v502_v18  ;;  %v462_v60 = vld [vmem:[#allocation7 + $0x648] sm:$0xff]  ;;  %v175_v16 = vperm.slane %v167_v8, 0  ;;  %v319_v18 = vld [vmem:[#allocation7 + $0x1d0] sm:$0xff] }
  0x75   :  { %614 = vmatpush.msra.mxu0 %v302_v19  ;;  %653 = vmatpush.msra.mxu2 %v434_v21  ;;  %v394_v61 = vld [vmem:[#allocation7 + $0x428] sm:$0xff]  ;;  %v383_v19 = vld [vmem:[#allocation7 + $0x3d0] sm:$0xff] }
  0x76   :  { %634 = vmatpush.msra.mxu1 %v366_v20  ;;  %673 = vmatpush.msra.mxu3 %v498_v22  ;;  %v458_v62 = vld [vmem:[#allocation7 + $0x628] sm:$0xff]  ;;  %v315_v22 = vld [vmem:[#allocation7 + $0x1b0] sm:$0xff] }
  0x77   :  { %615 = vmatpush.msra.mxu0 %v298_v23  ;;  %654 = vmatpush.msra.mxu2 %v430_v25  ;;  %v390_v63 = vld [vmem:[#allocation7 + $0x408] sm:$0xff]  ;;  %v379_v23 = vld [vmem:[#allocation7 + $0x3b0] sm:$0xff] }
  0x78   :  { %635 = vmatpush.msra.mxu1 %v362_v24  ;;  %674 = vmatpush.msra.mxu3 %v494_v26  ;;  %v454_v0 = vld [vmem:[#allocation7 + $0x608] sm:$0xff]  ;;  %v475_v8 = vld [vmem:[#allocation7 + $0x6b0] sm:$0xff] }
  0x79   :  { %616 = vmatpush.msra.mxu0 %v294_v27  ;;  %655 = vmatpush.msra.mxu2 %v426_v29  ;;  %v375_v29 = vld [vmem:[#allocation7 + $0x390] sm:$0xff] }
  0x7a   :  { %636 = vmatpush.msra.mxu1 %v358_v28  ;;  %675 = vmatpush.msra.mxu3 %v490_v30  ;;  %v311_v28 = vld [vmem:[#allocation7 + $0x190] sm:$0xff] }
  0x7b   :  { %617 = vmatpush.msra.mxu0 %v290_v31  ;;  %656 = vmatpush.msra.mxu2 %v422_v33  ;;  %v451_v30 = vld [vmem:[#allocation7 + $0x5f0] sm:$0xff] }
  0x7c   :  { %637 = vmatpush.msra.mxu1 %v354_v32  ;;  %676 = vmatpush.msra.mxu3 %v486_v34  ;;  %v515_v31 = vld [vmem:[#allocation7 + $0x7f0] sm:$0xff] }
  0x7d   :  { %618 = vmatpush.msra.mxu0 %v286_v35  ;;  %657 = vmatpush.msra.mxu2 %v418_v37  ;;  %v371_v32 = vld [vmem:[#allocation7 + $0x370] sm:$0xff] }
  0x7e   :  { %638 = vmatpush.msra.mxu1 %v350_v36  ;;  %677 = vmatpush.msra.mxu3 %v482_v38  ;;  %v307_v33 = vld [vmem:[#allocation7 + $0x170] sm:$0xff] }
  0x7f   :  { %619 = vmatpush.msra.mxu0 %v282_v39  ;;  %658 = vmatpush.msra.mxu2 %v414_v41  ;;  %v447_v34 = vld [vmem:[#allocation7 + $0x5d0] sm:$0xff] }
  0x80   :  { %639 = vmatpush.msra.mxu1 %v346_v40  ;;  %678 = vmatpush.msra.mxu3 %v478_v42  ;;  %v511_v35 = vld [vmem:[#allocation7 + $0x7d0] sm:$0xff] }
  0x81   :  { %620 = vmatpush.msra.mxu0 %v278_v43  ;;  %659 = vmatpush.msra.mxu2 %v410_v49  ;;  %v303_v36 = vld [vmem:[#allocation7 + $0x150] sm:$0xff] }
  0x82   :  { %640 = vmatpush.msra.mxu1 %v342_v44  ;;  %679 = vmatpush.msra.mxu3 %v474_v50  ;;  %v367_v37 = vld [vmem:[#allocation7 + $0x350] sm:$0xff] }
  0x83   :  { %621 = vmatpush.msra.mxu0 %v274_v45  ;;  %660 = vmatpush.msra.mxu2 %v406_v53  ;;  %v443_v38 = vld [vmem:[#allocation7 + $0x5b0] sm:$0xff] }
  0x84   :  { %641 = vmatpush.msra.mxu1 %v338_v46  ;;  %680 = vmatpush.msra.mxu3 %v470_v54  ;;  %v507_v39 = vld [vmem:[#allocation7 + $0x7b0] sm:$0xff] }
  0x85   :  { %622 = vmatpush.msra.mxu0 %v270_v47  ;;  %661 = vmatpush.msra.mxu2 %v402_v57  ;;  %v299_v40 = vld [vmem:[#allocation7 + $0x130] sm:$0xff] }
  0x86   :  { %642 = vmatpush.msra.mxu1 %v334_v48  ;;  %681 = vmatpush.msra.mxu3 %v466_v58  ;;  %v363_v41 = vld [vmem:[#allocation7 + $0x330] sm:$0xff] }
  0x87   :  { %623 = vmatpush.msra.mxu0 %v266_v51  ;;  %662 = vmatpush.msra.mxu2 %v398_v59  ;;  %v439_v42 = vld [vmem:[#allocation7 + $0x590] sm:$0xff] }
  0x88   :  { %643 = vmatpush.msra.mxu1 %v330_v52  ;;  %682 = vmatpush.msra.mxu3 %v462_v60  ;;  %v503_v43 = vld [vmem:[#allocation7 + $0x790] sm:$0xff] }
  0x89   :  { %624 = vmatpush.msra.mxu0 %v262_v55  ;;  %663 = vmatpush.msra.mxu2 %v394_v61  ;;  %v295_v44 = vld [vmem:[#allocation7 + $0x110] sm:$0xff] }
  0x8a   :  { %644 = vmatpush.msra.mxu1 %v326_v56  ;;  %683 = vmatpush.msra.mxu3 %v458_v62  ;;  %v359_v45 = vld [vmem:[#allocation7 + $0x310] sm:$0xff] }
  0x8b   :  { %664 = vmatpush.msra.mxu2 %v390_v63  ;;  %v435_v46 = vld [vmem:[#allocation7 + $0x570] sm:$0xff] }
  0x8c   :  { %684 = vmatpush.msra.mxu3 %v454_v0  ;;  %v499_v47 = vld [vmem:[#allocation7 + $0x770] sm:$0xff] }
  0x8d   :  { %v291_v48 = vld [vmem:[#allocation7 + $0xf0] sm:$0xff] }
  0x8e   :  { %v355_v49 = vld [vmem:[#allocation7 + $0x2f0] sm:$0xff] }
  0x8f   :  { %v431_v50 = vld [vmem:[#allocation7 + $0x550] sm:$0xff] }
  0x90   :  { %v495_v51 = vld [vmem:[#allocation7 + $0x750] sm:$0xff] }
  0x91   :  { %v287_v52 = vld [vmem:[#allocation7 + $0xd0] sm:$0xff] }
  0x92   :  { %v351_v53 = vld [vmem:[#allocation7 + $0x2d0] sm:$0xff] }
  0x93   :  { %v427_v54 = vld [vmem:[#allocation7 + $0x530] sm:$0xff] }
  0x94   :  { %v491_v55 = vld [vmem:[#allocation7 + $0x730] sm:$0xff] }
  0x95   :  { %v283_v56 = vld [vmem:[#allocation7 + $0xb0] sm:$0xff] }
  0x96   :  { %v347_v57 = vld [vmem:[#allocation7 + $0x2b0] sm:$0xff] }
  0x97   :  { %v423_v58 = vld [vmem:[#allocation7 + $0x510] sm:$0xff] }
  0x98   :  { %v487_v59 = vld [vmem:[#allocation7 + $0x710] sm:$0xff] }
  0x99   :  { %v279_v60 = vld [vmem:[#allocation7 + $0x90] sm:$0xff] }
  0x9a   :  { %v343_v61 = vld [vmem:[#allocation7 + $0x290] sm:$0xff] }
  0x9b   :  { %v419_v62 = vld [vmem:[#allocation7 + $0x4f0] sm:$0xff] }
  0x9c   :  { %v483_v63 = vld [vmem:[#allocation7 + $0x6f0] sm:$0xff] }
  0x9d   :  { %v275_v0 = vld [vmem:[#allocation7 + $0x70] sm:$0xff] }
  0x9e   :  { %v267_v9 = vld [vmem:[#allocation7 + $0x30] sm:$0xff] }
  0xb5   :  { %v194_v6 = vpop.f32.mrf.mxu0  ;;  %v214_v7 = vpop.f32.mrf.mxu1 }
  0xb6   :  { %v195_v10 = vadd.f32 %v194_v6, %v173_v4  ;;  %v215_v11 = vadd.f32 %v214_v7, %v174_v5  ;;  %v479_v4 = vld [vmem:[#allocation7 + $0x6d0] sm:$0xff] }
  0xb7   :  { %v271_v5 = vld [vmem:[#allocation7 + $0x50] sm:$0xff] }
  0xb8   :  { %v1264_v12 = vmax.f32 %v195_v10, 0.0  ;;  %v1266_v13 = vmax.f32 %v215_v11, 0.0  ;;  %v335_v6 = vld [vmem:[#allocation7 + $0x250] sm:$0xff] }
  0xb9   :  { %v411_v7 = vld [vmem:[#allocation7 + $0x4b0] sm:$0xff] }
  0xba   :  { %545 = vmatmul.f32.vlgmr.msrb.gmra.mxu0 %v1264_v12  ;;  %565 = vmatmul.f32.vlgmr.msrb.gmra.mxu1 %v1266_v13  ;;  %v331_v10 = vld [vmem:[#allocation7 + $0x230] sm:$0xff] }
  0xbb   :  { %689 = vmatpush.msrb.mxu0 %v323_v14  ;;  %709 = vmatpush.msrb.mxu1 %v387_v15  ;;  %v407_v11 = vld [vmem:[#allocation7 + $0x490] sm:$0xff] }
  0xbc   :  { %v234_v20 = vpop.f32.mrf.mxu2  ;;  %v254_v21 = vpop.f32.mrf.mxu3  ;;  %v471_v14 = vld [vmem:[#allocation7 + $0x690] sm:$0xff] }
  0xbd   :  { %v235_v24 = vadd.f32 %v234_v20, %v175_v16  ;;  %v255_v25 = vadd.f32 %v254_v21, %v176_v17  ;;  %690 = vmatpush.msrb.mxu0 %v319_v18  ;;  %710 = vmatpush.msrb.mxu1 %v383_v19  ;;  %v263_v15 = vld [vmem:[#allocation7 + $0x10] sm:$0xff]  ;;  %v324_v19 = vld [vmem:[#allocation7 + $0x1f8] sm:$0xff] }
  0xbe   :  { %v327_v16 = vld [vmem:[#allocation7 + $0x210] sm:$0xff]  ;;  %v388_v20 = vld [vmem:[#allocation7 + $0x3f8] sm:$0xff] }
  0xbf   :  { %v1270_v26 = vmax.f32 %v235_v24, 0.0  ;;  %v1272_v27 = vmax.f32 %v255_v25, 0.0  ;;  %691 = vmatpush.msrb.mxu0 %v315_v22  ;;  %711 = vmatpush.msrb.mxu1 %v379_v23  ;;  %v403_v17 = vld [vmem:[#allocation7 + $0x470] sm:$0xff]  ;;  %v320_v23 = vld [vmem:[#allocation7 + $0x1d8] sm:$0xff] }
  0xc0   :  { %v467_v18 = vld [vmem:[#allocation7 + $0x670] sm:$0xff]  ;;  %v384_v24 = vld [vmem:[#allocation7 + $0x3d8] sm:$0xff] }
  0xc1   :  { %585 = vmatmul.f32.vlgmr.msrb.gmra.mxu2 %v1270_v26  ;;  %605 = vmatmul.f32.vlgmr.msrb.gmra.mxu3 %v1272_v27  ;;  %v399_v21 = vld [vmem:[#allocation7 + $0x450] sm:$0xff] }
  0xc2   :  { %692 = vmatpush.msrb.mxu0 %v311_v28  ;;  %712 = vmatpush.msrb.mxu1 %v375_v29  ;;  %v463_v22 = vld [vmem:[#allocation7 + $0x650] sm:$0xff]  ;;  %v316_v29 = vld [vmem:[#allocation7 + $0x1b8] sm:$0xff] }
  0xc3   :  { %729 = vmatpush.msrb.mxu2 %v451_v30  ;;  %749 = vmatpush.msrb.mxu3 %v515_v31  ;;  %v395_v25 = vld [vmem:[#allocation7 + $0x430] sm:$0xff]  ;;  %v380_v30 = vld [vmem:[#allocation7 + $0x3b8] sm:$0xff] }
  0xc4   :  { %625 = vmatmul.f32.vlgmr.msra.gmra.mxu0 %v1264_v12  ;;  %713 = vmatpush.msrb.mxu1 %v371_v32  ;;  %v459_v28 = vld [vmem:[#allocation7 + $0x630] sm:$0xff] }
  0xc5   :  { %693 = vmatpush.msrb.mxu0 %v307_v33  ;;  %730 = vmatpush.msrb.mxu2 %v447_v34  ;;  %v391_v31 = vld [vmem:[#allocation7 + $0x410] sm:$0xff]  ;;  %v312_v33 = vld [vmem:[#allocation7 + $0x198] sm:$0xff] }
  0xc6   :  { %750 = vmatpush.msrb.mxu3 %v511_v35  ;;  %645 = vmatmul.f32.vlgmr.msra.gmra.mxu1 %v1266_v13  ;;  %v455_v32 = vld [vmem:[#allocation7 + $0x610] sm:$0xff]  ;;  %v376_v34 = vld [vmem:[#allocation7 + $0x398] sm:$0xff] }
  0xc7   :  { %694 = vmatpush.msrb.mxu0 %v303_v36  ;;  %714 = vmatpush.msrb.mxu1 %v367_v37  ;;  %v452_v35 = vld [vmem:[#allocation7 + $0x5f8] sm:$0xff] }
  0xc8   :  { %731 = vmatpush.msrb.mxu2 %v443_v38  ;;  %751 = vmatpush.msrb.mxu3 %v507_v39  ;;  %v516_v36 = vld [vmem:[#allocation7 + $0x7f8] sm:$0xff] }
  0xc9   :  { %695 = vmatpush.msrb.mxu0 %v299_v40  ;;  %715 = vmatpush.msrb.mxu1 %v363_v41  ;;  %v308_v37 = vld [vmem:[#allocation7 + $0x178] sm:$0xff] }
  0xca   :  { %732 = vmatpush.msrb.mxu2 %v439_v42  ;;  %752 = vmatpush.msrb.mxu3 %v503_v43  ;;  %v372_v38 = vld [vmem:[#allocation7 + $0x378] sm:$0xff] }
  0xcb   :  { %665 = vmatmul.f32.vlgmr.msra.gmra.mxu2 %v1270_v26  ;;  %685 = vmatmul.f32.vlgmr.msra.gmra.mxu3 %v1272_v27  ;;  %v448_v39 = vld [vmem:[#allocation7 + $0x5d8] sm:$0xff] }
  0xcc   :  { %696 = vmatpush.msrb.mxu0 %v295_v44  ;;  %716 = vmatpush.msrb.mxu1 %v359_v45  ;;  %v512_v40 = vld [vmem:[#allocation7 + $0x7d8] sm:$0xff] }
  0xcd   :  { %733 = vmatpush.msrb.mxu2 %v435_v46  ;;  %753 = vmatpush.msrb.mxu3 %v499_v47  ;;  %v304_v41 = vld [vmem:[#allocation7 + $0x158] sm:$0xff] }
  0xce   :  { %697 = vmatpush.msrb.mxu0 %v291_v48  ;;  %717 = vmatpush.msrb.mxu1 %v355_v49  ;;  %v368_v42 = vld [vmem:[#allocation7 + $0x358] sm:$0xff] }
  0xcf   :  { %734 = vmatpush.msrb.mxu2 %v431_v50  ;;  %754 = vmatpush.msrb.mxu3 %v495_v51  ;;  %v444_v43 = vld [vmem:[#allocation7 + $0x5b8] sm:$0xff] }
  0xd0   :  { %698 = vmatpush.msrb.mxu0 %v287_v52  ;;  %718 = vmatpush.msrb.mxu1 %v351_v53  ;;  %v508_v44 = vld [vmem:[#allocation7 + $0x7b8] sm:$0xff] }
  0xd1   :  { %735 = vmatpush.msrb.mxu2 %v427_v54  ;;  %755 = vmatpush.msrb.mxu3 %v491_v55  ;;  %v300_v45 = vld [vmem:[#allocation7 + $0x138] sm:$0xff] }
  0xd2   :  { %699 = vmatpush.msrb.mxu0 %v283_v56  ;;  %719 = vmatpush.msrb.mxu1 %v347_v57  ;;  %v364_v46 = vld [vmem:[#allocation7 + $0x338] sm:$0xff] }
  0xd3   :  { %736 = vmatpush.msrb.mxu2 %v423_v58  ;;  %756 = vmatpush.msrb.mxu3 %v487_v59  ;;  %v440_v47 = vld [vmem:[#allocation7 + $0x598] sm:$0xff] }
  0xd4   :  { %700 = vmatpush.msrb.mxu0 %v279_v60  ;;  %720 = vmatpush.msrb.mxu1 %v343_v61  ;;  %v504_v48 = vld [vmem:[#allocation7 + $0x798] sm:$0xff] }
  0xd5   :  { %737 = vmatpush.msrb.mxu2 %v419_v62  ;;  %757 = vmatpush.msrb.mxu3 %v483_v63  ;;  %v296_v49 = vld [vmem:[#allocation7 + $0x118] sm:$0xff] }
  0xd6   :  { %701 = vmatpush.msrb.mxu0 %v275_v0  ;;  %721 = vmatpush.msrb.mxu1 %v339_v2  ;;  %v360_v50 = vld [vmem:[#allocation7 + $0x318] sm:$0xff] }
  0xd7   :  { %738 = vmatpush.msrb.mxu2 %v415_v3  ;;  %758 = vmatpush.msrb.mxu3 %v479_v4  ;;  %v436_v51 = vld [vmem:[#allocation7 + $0x578] sm:$0xff] }
  0xd8   :  { %702 = vmatpush.msrb.mxu0 %v271_v5  ;;  %722 = vmatpush.msrb.mxu1 %v335_v6  ;;  %v500_v52 = vld [vmem:[#allocation7 + $0x778] sm:$0xff] }
  0xd9   :  { %739 = vmatpush.msrb.mxu2 %v411_v7  ;;  %759 = vmatpush.msrb.mxu3 %v475_v8  ;;  %v292_v53 = vld [vmem:[#allocation7 + $0xf8] sm:$0xff] }
  0xda   :  { %703 = vmatpush.msrb.mxu0 %v267_v9  ;;  %723 = vmatpush.msrb.mxu1 %v331_v10  ;;  %v356_v54 = vld [vmem:[#allocation7 + $0x2f8] sm:$0xff] }
  0xdb   :  { %740 = vmatpush.msrb.mxu2 %v407_v11  ;;  %760 = vmatpush.msrb.mxu3 %v471_v14  ;;  %v432_v55 = vld [vmem:[#allocation7 + $0x558] sm:$0xff] }
  0xdc   :  { %704 = vmatpush.msrb.mxu0 %v263_v15  ;;  %724 = vmatpush.msrb.mxu1 %v327_v16  ;;  %v496_v56 = vld [vmem:[#allocation7 + $0x758] sm:$0xff] }
  0xdd   :  { %741 = vmatpush.msrb.mxu2 %v403_v17  ;;  %761 = vmatpush.msrb.mxu3 %v467_v18  ;;  %v288_v57 = vld [vmem:[#allocation7 + $0xd8] sm:$0xff] }
  0xde   :  { %705 = vmatmul.f32.vlgmr.msrb.gmra.mxu0 %v1264_v12  ;;  %725 = vmatmul.f32.vlgmr.msrb.gmra.mxu1 %v1266_v13  ;;  %v352_v58 = vld [vmem:[#allocation7 + $0x2d8] sm:$0xff] }
  0xdf   :  { %769 = vmatpush.msra.mxu0 %v324_v19  ;;  %789 = vmatpush.msra.mxu1 %v388_v20  ;;  %v428_v59 = vld [vmem:[#allocation7 + $0x538] sm:$0xff] }
  0xe0   :  { %742 = vmatpush.msrb.mxu2 %v399_v21  ;;  %762 = vmatpush.msrb.mxu3 %v463_v22  ;;  %v492_v60 = vld [vmem:[#allocation7 + $0x738] sm:$0xff] }
  0xe1   :  { %770 = vmatpush.msra.mxu0 %v320_v23  ;;  %790 = vmatpush.msra.mxu1 %v384_v24  ;;  %v284_v61 = vld [vmem:[#allocation7 + $0xb8] sm:$0xff] }
  0xe2   :  { %743 = vmatpush.msrb.mxu2 %v395_v25  ;;  %763 = vmatpush.msrb.mxu3 %v459_v28  ;;  %v348_v62 = vld [vmem:[#allocation7 + $0x2b8] sm:$0xff] }
  0xe3   :  { %771 = vmatpush.msra.mxu0 %v316_v29  ;;  %791 = vmatpush.msra.mxu1 %v380_v30  ;;  %v424_v63 = vld [vmem:[#allocation7 + $0x518] sm:$0xff] }
  0xe4   :  { %744 = vmatpush.msrb.mxu2 %v391_v31  ;;  %764 = vmatpush.msrb.mxu3 %v455_v32  ;;  %v488_v0 = vld [vmem:[#allocation7 + $0x718] sm:$0xff]  ;;  %v867_v32 = vld [vmem:[#allocation8 + $0x70] sm:$0xff] }
  0xe5   :  { %745 = vmatmul.f32.vlgmr.msrb.gmra.mxu2 %v1270_v26  ;;  %765 = vmatmul.f32.vlgmr.msrb.gmra.mxu3 %v1272_v27  ;;  %v280_v2 = vld [vmem:[#allocation7 + $0x98] sm:$0xff] }
  0xe6   :  { %772 = vmatpush.msra.mxu0 %v312_v33  ;;  %792 = vmatpush.msra.mxu1 %v376_v34  ;;  %v344_v3 = vld [vmem:[#allocation7 + $0x298] sm:$0xff]  ;;  %v883_v33 = vld [vmem:[#allocation8 + $0xf0] sm:$0xff] }
  0xe7   :  { %809 = vmatpush.msra.mxu2 %v452_v35  ;;  %829 = vmatpush.msra.mxu3 %v516_v36  ;;  %v420_v4 = vld [vmem:[#allocation7 + $0x4f8] sm:$0xff]  ;;  %v866_v36 = vld [vmem:[#allocation8 + $0x68] sm:$0xff] }
  0xe8   :  { %773 = vmatpush.msra.mxu0 %v308_v37  ;;  %793 = vmatpush.msra.mxu1 %v372_v38  ;;  %v484_v5 = vld [vmem:[#allocation7 + $0x6f8] sm:$0xff]  ;;  %v863_v37 = vld [vmem:[#allocation8 + $0x50] sm:$0xff]  ;;  %v862_v38 = vld [vmem:[#allocation8 + $0x48] sm:$0xff] }
  0xe9   :  { %810 = vmatpush.msra.mxu2 %v448_v39  ;;  %830 = vmatpush.msra.mxu3 %v512_v40  ;;  %v276_v6 = vld [vmem:[#allocation7 + $0x78] sm:$0xff]  ;;  %v882_v39 = vld [vmem:[#allocation8 + $0xe8] sm:$0xff]  ;;  %v861_v40 = vld [vmem:[#allocation8 + $0x40] sm:$0xff] }
  0xea   :  { %774 = vmatpush.msra.mxu0 %v304_v41  ;;  %794 = vmatpush.msra.mxu1 %v368_v42  ;;  %v340_v7 = vld [vmem:[#allocation7 + $0x278] sm:$0xff]  ;;  %v881_v41 = vld [vmem:[#allocation8 + $0xe0] sm:$0xff] }
  0xeb   :  { %811 = vmatpush.msra.mxu2 %v444_v43  ;;  %831 = vmatpush.msra.mxu3 %v508_v44  ;;  %v416_v8 = vld [vmem:[#allocation7 + $0x4d8] sm:$0xff]  ;;  %v879_v44 = vld [vmem:[#allocation8 + $0xd0] sm:$0xff] }
  0xec   :  { %775 = vmatpush.msra.mxu0 %v300_v45  ;;  %795 = vmatpush.msra.mxu1 %v364_v46  ;;  %v480_v9 = vld [vmem:[#allocation7 + $0x6d8] sm:$0xff]  ;;  %v878_v45 = vld [vmem:[#allocation8 + $0xc8] sm:$0xff]  ;;  %v857_v46 = vld [vmem:[#allocation8 + $0x20] sm:$0xff] }
  0xed   :  { %812 = vmatpush.msra.mxu2 %v440_v47  ;;  %832 = vmatpush.msra.mxu3 %v504_v48  ;;  %v272_v10 = vld [vmem:[#allocation7 + $0x58] sm:$0xff]  ;;  %v877_v47 = vld [vmem:[#allocation8 + $0xc0] sm:$0xff] }
  0xee   :  { %776 = vmatpush.msra.mxu0 %v296_v49  ;;  %796 = vmatpush.msra.mxu1 %v360_v50  ;;  %v336_v11 = vld [vmem:[#allocation7 + $0x258] sm:$0xff]  ;;  %v855_v50 = vld [vmem:[#allocation8 + $0x10] sm:$0xff] }
  0xef   :  { %813 = vmatpush.msra.mxu2 %v436_v51  ;;  %833 = vmatpush.msra.mxu3 %v500_v52  ;;  %v412_v14 = vld [vmem:[#allocation7 + $0x4b8] sm:$0xff]  ;;  %v875_v51 = vld [vmem:[#allocation8 + $0xb0] sm:$0xff]  ;;  %v854_v52 = vld [vmem:[#allocation8 + $0x8] sm:$0xff] }
  0xf0   :  { %777 = vmatpush.msra.mxu0 %v292_v53  ;;  %797 = vmatpush.msra.mxu1 %v356_v54  ;;  %v476_v15 = vld [vmem:[#allocation7 + $0x6b8] sm:$0xff]  ;;  %v874_v53 = vld [vmem:[#allocation8 + $0xa8] sm:$0xff] }
  0xf1   :  { %814 = vmatpush.msra.mxu2 %v432_v55  ;;  %834 = vmatpush.msra.mxu3 %v496_v56  ;;  %v268_v16 = vld [vmem:[#allocation7 + $0x38] sm:$0xff]  ;;  %v853_v55 = vld [vmem:[#allocation8] sm:$0xff] }
  0xf2   :  { %778 = vmatpush.msra.mxu0 %v288_v57  ;;  %798 = vmatpush.msra.mxu1 %v352_v58  ;;  %v332_v17 = vld [vmem:[#allocation7 + $0x238] sm:$0xff]  ;;  %v873_v56 = vld [vmem:[#allocation8 + $0xa0] sm:$0xff]  ;;  %v899_v58 = vld [vmem:[#allocation8 + $0x170] sm:$0xff] }
  0xf3   :  { %815 = vmatpush.msra.mxu2 %v428_v59  ;;  %835 = vmatpush.msra.mxu3 %v492_v60  ;;  %v408_v18 = vld [vmem:[#allocation7 + $0x498] sm:$0xff]  ;;  %v871_v59 = vld [vmem:[#allocation8 + $0x90] sm:$0xff]  ;;  %v898_v60 = vld [vmem:[#allocation8 + $0x168] sm:$0xff] }
  0xf4   :  { %779 = vmatpush.msra.mxu0 %v284_v61  ;;  %799 = vmatpush.msra.mxu1 %v348_v62  ;;  %v472_v19 = vld [vmem:[#allocation7 + $0x698] sm:$0xff]  ;;  %v870_v61 = vld [vmem:[#allocation8 + $0x88] sm:$0xff]  ;;  %v517_v62 = vperm.slane %v1258_v1, 1 }
  0xf5   :  { %816 = vmatpush.msra.mxu2 %v424_v63  ;;  %836 = vmatpush.msra.mxu3 %v488_v0  ;;  %v264_v20 = vld [vmem:[#allocation7 + $0x18] sm:$0xff]  ;;  %v897_v63 = vld [vmem:[#allocation8 + $0x160] sm:$0xff] }
  0xf6   :  { %780 = vmatpush.msra.mxu0 %v280_v2  ;;  %800 = vmatpush.msra.mxu1 %v344_v3  ;;  %v328_v21 = vld [vmem:[#allocation7 + $0x218] sm:$0xff]  ;;  %v869_v0 = vld [vmem:[#allocation8 + $0x80] sm:$0xff]  ;;  %v525_v3 = vperm.slane %v517_v62, 1  ;;  %v520_v62 = vperm.slane %v1258_v1, 7 }
  0xf7   :  { %817 = vmatpush.msra.mxu2 %v420_v4  ;;  %837 = vmatpush.msra.mxu3 %v484_v5  ;;  %v404_v22 = vld [vmem:[#allocation7 + $0x478] sm:$0xff]  ;;  %v895_v4 = vld [vmem:[#allocation8 + $0x150] sm:$0xff] }
  0xf8   :  { %781 = vmatpush.msra.mxu0 %v276_v6  ;;  %801 = vmatpush.msra.mxu1 %v340_v7  ;;  %v468_v23 = vld [vmem:[#allocation7 + $0x678] sm:$0xff]  ;;  %v894_v7 = vld [vmem:[#allocation8 + $0x148] sm:$0xff] }
  0xf9   :  { %818 = vmatpush.msra.mxu2 %v416_v8  ;;  %838 = vmatpush.msra.mxu3 %v480_v9  ;;  %v400_v24 = vld [vmem:[#allocation7 + $0x458] sm:$0xff]  ;;  %v893_v8 = vld [vmem:[#allocation8 + $0x140] sm:$0xff] }
  0xfa   :  { %782 = vmatpush.msra.mxu0 %v272_v10  ;;  %802 = vmatpush.msra.mxu1 %v336_v11  ;;  %v464_v25 = vld [vmem:[#allocation7 + $0x658] sm:$0xff] }
  0xfb   :  { %819 = vmatpush.msra.mxu2 %v412_v14  ;;  %839 = vmatpush.msra.mxu3 %v476_v15  ;;  %v868_v28 = vld [vmem:[#allocation8 + $0x78] sm:$0xff]  ;;  %v518_v14 = vperm.slane %v1258_v1, 3  ;;  %v891_v15 = vld [vmem:[#allocation8 + $0x130] sm:$0xff] }
  0xfc   :  { %783 = vmatpush.msra.mxu0 %v268_v16  ;;  %803 = vmatpush.msra.mxu1 %v332_v17  ;;  %v884_v29 = vld [vmem:[#allocation8 + $0xf8] sm:$0xff]  ;;  %v890_v16 = vld [vmem:[#allocation8 + $0x128] sm:$0xff] }
  0xfd   :  { %820 = vmatpush.msra.mxu2 %v408_v18  ;;  %840 = vmatpush.msra.mxu3 %v472_v19  ;;  %v396_v30 = vld [vmem:[#allocation7 + $0x438] sm:$0xff]  ;;  %v526_v18 = vperm.slane %v518_v14, 1 }
  0xfe   :  { %784 = vmatpush.msra.mxu0 %v264_v20  ;;  %804 = vmatpush.msra.mxu1 %v328_v21  ;;  %v460_v31 = vld [vmem:[#allocation7 + $0x638] sm:$0xff]  ;;  %v889_v20 = vld [vmem:[#allocation8 + $0x120] sm:$0xff] }
  0xff   :  { %821 = vmatpush.msra.mxu2 %v404_v22  ;;  %841 = vmatpush.msra.mxu3 %v468_v23  ;;  %v392_v34 = vld [vmem:[#allocation7 + $0x418] sm:$0xff] }
 0x100   :  { %785 = vmatmul.f32.vlgmr.msra.gmra.mxu0 %v1264_v12  ;;  %805 = vmatmul.f32.vlgmr.msra.gmra.mxu1 %v1266_v13  ;;  %v456_v35 = vld [vmem:[#allocation7 + $0x618] sm:$0xff]  ;;  %v865_v12 = vld [vmem:[#allocation8 + $0x60] sm:$0xff] }
 0x101   :  { %822 = vmatpush.msra.mxu2 %v400_v24  ;;  %842 = vmatpush.msra.mxu3 %v464_v25  ;;  %v864_v13 = vld [vmem:[#allocation8 + $0x58] sm:$0xff] }
 0x102   :  { %921 = vmatpush.msrb.mxu0 %v868_v28  ;;  %941 = vmatpush.msrb.mxu1 %v884_v29  ;;  %v860_v42 = vld [vmem:[#allocation8 + $0x38] sm:$0xff] }
 0x103   :  { %823 = vmatpush.msra.mxu2 %v396_v30  ;;  %843 = vmatpush.msra.mxu3 %v460_v31  ;;  %v880_v43 = vld [vmem:[#allocation8 + $0xd8] sm:$0xff]  ;;  %v887_v30 = vld [vmem:[#allocation8 + $0x110] sm:$0xff] }
 0x104   :  { %922 = vmatpush.msrb.mxu0 %v867_v32  ;;  %942 = vmatpush.msrb.mxu1 %v883_v33  ;;  %v856_v48 = vld [vmem:[#allocation8 + $0x18] sm:$0xff]  ;;  %v886_v32 = vld [vmem:[#allocation8 + $0x108] sm:$0xff]  ;;  %v885_v33 = vld [vmem:[#allocation8 + $0x100] sm:$0xff] }
 0x105   :  { %824 = vmatpush.msra.mxu2 %v392_v34  ;;  %844 = vmatpush.msra.mxu3 %v456_v35  ;;  %v876_v49 = vld [vmem:[#allocation8 + $0xb8] sm:$0xff] }
 0x106   :  { %825 = vmatmul.f32.vlgmr.msra.gmra.mxu2 %v1270_v26  ;;  %845 = vmatmul.f32.vlgmr.msra.gmra.mxu3 %v1272_v27  ;;  %v859_v26 = vld [vmem:[#allocation8 + $0x30] sm:$0xff]  ;;  %v858_v27 = vld [vmem:[#allocation8 + $0x28] sm:$0xff]  ;;  %v900_v54 = vld [vmem:[#allocation8 + $0x178] sm:$0xff] }
 0x107   :  { %923 = vmatpush.msrb.mxu0 %v866_v36  ;;  %943 = vmatpush.msrb.mxu1 %v882_v39  ;;  %v872_v57 = vld [vmem:[#allocation8 + $0x98] sm:$0xff] }
 0x108   :  { %961 = vmatpush.msrb.mxu2 %v900_v54  ;;  %v896_v2 = vld [vmem:[#allocation8 + $0x158] sm:$0xff] }
 0x109   :  { %924 = vmatpush.msrb.mxu0 %v865_v12  ;;  %944 = vmatpush.msrb.mxu1 %v881_v41  ;;  %v892_v9 = vld [vmem:[#allocation8 + $0x138] sm:$0xff]  ;;  %v915_v12 = vld [vmem:[#allocation8 + $0x1f0] sm:$0xff] }
 0x10a   :  { %962 = vmatpush.msrb.mxu2 %v899_v58  ;;  %v888_v28 = vld [vmem:[#allocation8 + $0x118] sm:$0xff] }
 0x10b   :  { %925 = vmatpush.msrb.mxu0 %v864_v13  ;;  %945 = vmatpush.msrb.mxu1 %v880_v43  ;;  %v916_v36 = vld [vmem:[#allocation8 + $0x1f8] sm:$0xff]  ;;  %v519_v43 = vperm.slane %v1258_v1, 5 }
 0x10c   :  { %963 = vmatpush.msrb.mxu2 %v898_v60  ;;  %981 = vmatpush.msrb.mxu3 %v916_v36  ;;  %v912_v41 = vld [vmem:[#allocation8 + $0x1d8] sm:$0xff] }
 0x10d   :  { %926 = vmatpush.msrb.mxu0 %v863_v37  ;;  %946 = vmatpush.msrb.mxu1 %v879_v44  ;;  %v909_v44 = vld [vmem:[#allocation8 + $0x1c0] sm:$0xff]  ;;  %v904_v54 = vld [vmem:[#allocation8 + $0x198] sm:$0xff] }
 0x10e   :  { %964 = vmatpush.msrb.mxu2 %v897_v63  ;;  %982 = vmatpush.msrb.mxu3 %v915_v12  ;;  %v528_v63 = vperm.slane %v520_v62, 1 }
 0x10f   :  { %927 = vmatpush.msrb.mxu0 %v862_v38  ;;  %947 = vmatpush.msrb.mxu1 %v878_v45  ;;  %v914_v38 = vld [vmem:[#allocation8 + $0x1e8] sm:$0xff] }
 0x110   :  { %965 = vmatpush.msrb.mxu2 %v896_v2  ;;  %983 = vmatpush.msrb.mxu3 %v914_v38 }
 0x111   :  { %928 = vmatpush.msrb.mxu0 %v861_v40  ;;  %948 = vmatpush.msrb.mxu1 %v877_v47  ;;  %v913_v40 = vld [vmem:[#allocation8 + $0x1e0] sm:$0xff]  ;;  %v907_v47 = vld [vmem:[#allocation8 + $0x1b0] sm:$0xff] }
 0x112   :  { %966 = vmatpush.msrb.mxu2 %v895_v4  ;;  %984 = vmatpush.msrb.mxu3 %v913_v40 }
 0x113   :  { %929 = vmatpush.msrb.mxu0 %v860_v42  ;;  %949 = vmatpush.msrb.mxu1 %v876_v49  ;;  %v911_v42 = vld [vmem:[#allocation8 + $0x1d0] sm:$0xff] }
 0x114   :  { %967 = vmatpush.msrb.mxu2 %v894_v7  ;;  %985 = vmatpush.msrb.mxu3 %v912_v41 }
 0x115   :  { %930 = vmatpush.msrb.mxu0 %v859_v26  ;;  %950 = vmatpush.msrb.mxu1 %v875_v51  ;;  %v910_v26 = vld [vmem:[#allocation8 + $0x1c8] sm:$0xff] }
 0x116   :  { %968 = vmatpush.msrb.mxu2 %v893_v8  ;;  %986 = vmatpush.msrb.mxu3 %v911_v42 }
 0x117   :  { %931 = vmatpush.msrb.mxu0 %v858_v27  ;;  %951 = vmatpush.msrb.mxu1 %v874_v53  ;;  %v527_v27 = vperm.slane %v519_v43, 1 }
 0x118   :  { %969 = vmatpush.msrb.mxu2 %v892_v9  ;;  %987 = vmatpush.msrb.mxu3 %v910_v26 }
 0x119   :  { %932 = vmatpush.msrb.mxu0 %v857_v46  ;;  %952 = vmatpush.msrb.mxu1 %v873_v56  ;;  %v908_v46 = vld [vmem:[#allocation8 + $0x1b8] sm:$0xff] }
 0x11a   :  { %970 = vmatpush.msrb.mxu2 %v891_v15  ;;  %988 = vmatpush.msrb.mxu3 %v909_v44 }
 0x11b   :  { %933 = vmatpush.msrb.mxu0 %v856_v48  ;;  %953 = vmatpush.msrb.mxu1 %v872_v57  ;;  %v906_v48 = vld [vmem:[#allocation8 + $0x1a8] sm:$0xff]  ;;  %v903_v57 = vld [vmem:[#allocation8 + $0x190] sm:$0xff] }
 0x11c   :  { %971 = vmatpush.msrb.mxu2 %v890_v16  ;;  %989 = vmatpush.msrb.mxu3 %v908_v46 }
 0x11d   :  { %934 = vmatpush.msrb.mxu0 %v855_v50  ;;  %954 = vmatpush.msrb.mxu1 %v871_v59  ;;  %v905_v50 = vld [vmem:[#allocation8 + $0x1a0] sm:$0xff]  ;;  %v902_v59 = vld [vmem:[#allocation8 + $0x188] sm:$0xff] }
 0x11e   :  { %972 = vmatpush.msrb.mxu2 %v889_v20  ;;  %990 = vmatpush.msrb.mxu3 %v907_v47 }
 0x11f   :  { %935 = vmatpush.msrb.mxu0 %v854_v52  ;;  %955 = vmatpush.msrb.mxu1 %v870_v61  ;;  %v901_v61 = vld [vmem:[#allocation8 + $0x180] sm:$0xff] }
 0x120   :  { %973 = vmatpush.msrb.mxu2 %v888_v28  ;;  %991 = vmatpush.msrb.mxu3 %v906_v48 }
 0x121   :  { %936 = vmatpush.msrb.mxu0 %v853_v55  ;;  %956 = vmatpush.msrb.mxu1 %v869_v0 }
 0x122   :  { %974 = vmatpush.msrb.mxu2 %v887_v30  ;;  %992 = vmatpush.msrb.mxu3 %v905_v50 }
 0x124   :  { %975 = vmatpush.msrb.mxu2 %v886_v32  ;;  %993 = vmatpush.msrb.mxu3 %v904_v54 }
 0x126   :  { %976 = vmatpush.msrb.mxu2 %v885_v33  ;;  %994 = vmatpush.msrb.mxu3 %v903_v57 }
 0x128   :  { %995 = vmatpush.msrb.mxu3 %v902_v59 }
 0x12a   :  { %996 = vmatpush.msrb.mxu3 %v901_v61 }
 0x137   :  { %v546_v5 = vpop.f32.mrf.mxu0  ;;  %v566_v10 = vpop.f32.mrf.mxu1 }
 0x138   :  { %v547_v6 = vadd.f32 %v546_v5, %v525_v3 }
 0x13a   :  { %v567_v11 = vadd.f32 %v566_v10, %v547_v6  ;;  %v1041_v10 = vld [vmem:[%s1303_s5] ss:$0 sm:$0xff]  ;;  %s1017_s5 = sshll.u32 %s1207_s23, 4  ;;  %s1018_s5 = int_to_ptr.vmem [resolvable:$true] %s1017_s5 }
 0x141   :  { %v626_v21 = vpop.f32.mrf.mxu0 }
 0x142   :  { %v627_v24 = vadd.f32 %v626_v21, %v526_v18 }
 0x143   :  { %v646_v29 = vpop.f32.mrf.mxu1 }
 0x144   :  { %v586_v17 = vpop.f32.mrf.mxu2  ;;  %v606_v22 = vpop.f32.mrf.mxu3  ;;  %v647_v31 = vadd.f32 %v646_v29, %v627_v24 }
 0x145   :  { %v587_v19 = vadd.f32 %v586_v17, %v567_v11 }
 0x147   :  { %v607_v23 = vadd.f32 %v606_v22, %v587_v19 }
 0x149   :  { %v849_v25 = vmax.f32 %v607_v23, 0.0 }
 0x14b   :  { %937 = vmatmul.f32.vlgmr.msrb.gmra.mxu0 %v849_v25 }
 0x14e   :  { %v666_v34 = vpop.f32.mrf.mxu2  ;;  %v686_v13 = vpop.f32.mrf.mxu3 }
 0x14f   :  { %v667_v35 = vadd.f32 %v666_v34, %v647_v31 }
 0x151   :  { %v687_v37 = vadd.f32 %v686_v13, %v667_v35 }
 0x153   :  { %v850_v39 = vmax.f32 %v687_v37, 0.0 }
 0x155   :  { %957 = vmatmul.f32.vlgmr.msrb.gmra.mxu1 %v850_v39 }
 0x15b   :  { %v706_v45 = vpop.f32.mrf.mxu0  ;;  %v726_v51 = vpop.f32.mrf.mxu1 }
 0x15c   :  { %v707_v49 = vadd.f32 %v706_v45, %v527_v27 }
 0x15e   :  { %v727_v52 = vadd.f32 %v726_v51, %v707_v49 }
 0x168   :  { %v746_v53 = vpop.f32.mrf.mxu2  ;;  %v766_v56 = vpop.f32.mrf.mxu3 }
 0x169   :  { %v747_v55 = vadd.f32 %v746_v53, %v727_v52 }
 0x16b   :  { %v767_v58 = vadd.f32 %v766_v56, %v747_v55 }
 0x16d   :  { %v851_v60 = vmax.f32 %v767_v58, 0.0 }
 0x16f   :  { %977 = vmatmul.f32.vlgmr.msrb.gmra.mxu2 %v851_v60 }
 0x17d   :  { %v786_v0 = vpop.f32.mrf.mxu0  ;;  %v806_v3 = vpop.f32.mrf.mxu1 }
 0x17e   :  { %v787_v2 = vadd.f32 %v786_v0, %v528_v63 }
 0x180   :  { %v807_v4 = vadd.f32 %v806_v3, %v787_v2 }
 0x189   :  { %v826_v5 = vpop.f32.mrf.mxu2  ;;  %v846_v7 = vpop.f32.mrf.mxu3 }
 0x18a   :  { %v827_v6 = vadd.f32 %v826_v5, %v807_v4 }
 0x18c   :  { %v847_v8 = vadd.f32 %v846_v7, %v827_v6 }
 0x18e   :  { %v852_v9 = vmax.f32 %v847_v8, 0.0 }
 0x190   :  { %997 = vmatmul.f32.vlgmr.msrb.gmra.mxu3 %v852_v9 }
 0x1c8   :  { %v938_v11 = vpop.f32.mrf.mxu0 }
 0x1c9   :  { %v939_v15 = vadd.f32 %v1041_v10, %v938_v11 }
 0x1d2   :  { %v958_v14 = vpop.f32.mrf.mxu1 }
 0x1d3   :  { %v959_v1 = vadd.f32 %v958_v14, %v939_v15 }
 0x1f2   :  { %v978_v16 = vpop.f32.mrf.mxu2 }
 0x1f3   :  { %v979_v17 = vadd.f32 %v978_v16, %v959_v1 }
 0x213   :  { %v998_v18 = vpop.f32.mrf.mxu3 }
 0x214   :  { %v999_v19 = vadd.f32 %v998_v18, %v979_v17 }
 0x216   :  { %1001 = vmax.xlane.f32.xlu0 %v999_v19 }
 0x289   :  { %v1002_v20 = vpop.xlane.xlu0 %1001 }
 0x28a   :  { %v1003_v21 = vsub.f32 %v999_v19, %v1002_v20 }
 0x28c   :  { %v1004_v22 = vmul.f32 1.442695, %v1003_v21 }
 0x28e   :  { %1042 = vpow2.f32 %v1004_v22 }
 0x294   :  { %v1043_v23 = vpop.eup %1042 }
 0x295   :  { %1006 = vadd.xlane.f32.xlu0 %v1043_v23 }
 0x308   :  { %v1007_v24 = vpop.xlane.xlu0 %1006 }
 0x309   :  { %1044 = vlog2.f32 %v1007_v24 }
 0x30f   :  { %v1045_v25 = vpop.eup %1044 }
 0x310   :  { %v1009_v28 = vmul.f32 0.6931472, %v1045_v25 }
 0x312   :  { %v1010_v29 = vsub.f32 %v1003_v21, %v1009_v28 }
 0x314   :  { %1011 = vst [vmem:[#allocation11] sm:$0xff] %v1010_v29 }
 0x315   :  { %1022 = dma.vmem_to_hbm [thread:$0]  %s1018_s5, 128, %s1020_s26, [#allocation4]  }
 0x316   :  { %1196 = dma.done.wait [#allocation4], 128  }
 0x317   :  { %1197 = vsyncadd [#allocation4], 4294967168 }
 0x318   :  { %1027 = vsyncpa [#allocation3], 1 }
 0x319   :  { %1028 = vsyncpa [#allocation6], 1 }
 0x31a   :  { %1029 = vsyncpa [#allocation9], 1 }
 0x31b   :  { %1030 = vsyncpa [#allocation4], 1 }

</bundles_post_ra>
